<compile_context>
chip_gen: v5e
topology: v5e:2x2
jax: 0.10.0
libtpu: 0.0.40
codegen_flags: <defaults>
</compile_context>

<pallas_src>
import functools

import jax
import jax.numpy as jnp
from jax.experimental import pallas as pl
from jax.experimental.pallas import tpu as pltpu

H1 = 512          # fixed by the module: nn.Linear(num_inputs, 512)
H2 = 256          # fixed by the module: nn.Linear(512, 256)
BN_EPS = 1e-5     # torch.nn.BatchNorm1d default eps
_LANE = 128
_MIB = 1024 * 1024
_VMEM_BUDGET = 48 * _MIB   # per-step working-set target; fits v7x's 64 MiB VMEM


def _round_up(x, m):
    return ((x + m - 1) // m) * m


def dnn_kernel(x_ref, w1_ref, b1_ref, w2_ref, b2_ref, w3_ref, b3_ref, o_ref,
               *, approx_sigmoid=False):
    # Layer 1: Linear(Din, 512) + ReLU   (BN1 folded into layer-2 weights).
    h1 = jnp.dot(x_ref[...], w1_ref[...], preferred_element_type=jnp.float32)
    h1 = jnp.maximum(h1 + b1_ref[...], 0.0)
    # Layer 2: Linear(512, 256) with BN1 pre-folded, then ReLU.
    h2 = jnp.dot(h1.astype(w2_ref.dtype), w2_ref[...],
                 preferred_element_type=jnp.float32)
    h2 = jnp.maximum(h2 + b2_ref[...], 0.0)
    # Layer 3: Linear(256, Dout_padded) with BN2 pre-folded, then sigmoid.
    z = jnp.dot(h2.astype(w3_ref.dtype), w3_ref[...],
                preferred_element_type=jnp.float32) + b3_ref[...]
    if approx_sigmoid:
        # exp (EUP) + approximate reciprocal (EUP): keeps the epilogue off the
        # VALU.  Only used for low-precision compute dtypes.
        y = pl.reciprocal(1.0 + jnp.exp(-z), approx=True)
    else:
        y = jax.nn.sigmoid(z)
    o_ref[...] = y.astype(o_ref.dtype)


def _fold_bn_into_next_linear(gamma, beta, mean, var, w_next, b_next):
    """Eval-mode BatchNorm1d folded into the following Linear (exact).

    bn(h) = h * s + t  with  s = gamma / sqrt(var + eps),  t = beta - mean * s
    bn(h) @ W + b  ==  h @ (s[:, None] * W) + (t @ W + b)
    """
    s = gamma / jnp.sqrt(var + BN_EPS)
    t = beta - mean * s
    return s[:, None] * w_next, t @ w_next + b_next


def _vmem_bytes(tb, din, dout_p, in_itemsize, out_itemsize, x_buffers,
                weight_buffers):
    """Rough per-step VMEM working-set estimate used for tile sizing."""
    din_p = _round_up(din, _LANE)
    weights = weight_buffers * (
        (din_p * H1 + H1 * H2 + H2 * dout_p) * in_itemsize
        + (H1 + H2 + dout_p) * 4)
    x_tiles = x_buffers * tb * din_p * in_itemsize
    intermediates = tb * (H1 + H2) * 4          # h1 / h2 f32 temporaries
    out_tiles = 2 * tb * dout_p * out_itemsize
    return weights + x_tiles + intermediates + out_tiles


def _build_and_run(args, *, tb, grid, din, dout_p, out_dtype, approx_sigmoid,
                   x_buffers, use_pipeline_modes, vmem_limit, cost):
    b_total = args[0].shape[0]

    def const_spec(shape):
        # Constant index map -> tensor is DMA'd once and stays resident in
        # VMEM; single-buffer it to halve its footprint.
        if use_pipeline_modes:
            return pl.BlockSpec(shape, lambda i: (0, 0),
                                pipeline_mode=pl.Buffered(1))
        return pl.BlockSpec(shape, lambda i: (0, 0))

    if use_pipeline_modes and x_buffers != 2:
        x_spec = pl.BlockSpec((tb, din), lambda i: (i, 0),
                              pipeline_mode=pl.Buffered(x_buffers))
    else:
        x_spec = pl.BlockSpec((tb, din), lambda i: (i, 0))

    return pl.pallas_call(
        functools.partial(dnn_kernel, approx_sigmoid=approx_sigmoid),
        out_shape=jax.ShapeDtypeStruct((b_total, dout_p), out_dtype),
        grid_spec=pltpu.PrefetchScalarGridSpec(
            num_scalar_prefetch=0,
            grid=grid,
            in_specs=[
                x_spec,                      # x: tiled over batch
                const_spec((din, H1)),       # weights / biases: resident
                const_spec((1, H1)),
                const_spec((H1, H2)),
                const_spec((1, H2)),
                const_spec((H2, dout_p)),
                const_spec((1, dout_p)),
            ],
            out_specs=pl.BlockSpec((tb, dout_p), lambda i: (i, 0)),
        ),
        compiler_params=pltpu.CompilerParams(
            dimension_semantics=("parallel",),   # batch tiles -> 2 TCs on v7x
            vmem_limit_bytes=vmem_limit,
        ),
        cost_estimate=cost,
    )(*args)


def dnn_forward(x, params, *, block_batch=512, compute_dtype=None,
                out_dtype=None, x_buffers=2):
    """Eval-mode forward of the DNN module as a single Pallas kernel.

    x: (B, Din) float32.
    params: dict with
      w1 (Din,512), b1 (512,), g1, beta1, m1, v1 (512,),
      w2 (512,256), b2 (256,), g2, beta2, m2, v2 (256,),
      w3 (256,Dout), b3 (Dout,).
    Weights are stored pre-transposed as (in_features, out_features).
    compute_dtype: jnp.bfloat16 recommended on v5e/v6e/v7x (2x+ MXU throughput
      and half the x HBM traffic; accumulation stays f32); None keeps f32.
    out_dtype: output dtype (None -> float32); use bf16 when downstream allows.
    x_buffers: pipeline depth for the x tile (raise to 3 if x DMA is exposed
      for very large Din).
    """
    B, Din = x.shape
    Dout = params["w3"].shape[1]
    Dout_p = _round_up(Dout, _LANE)   # lane-dense output -> unmasked stores
    out_dtype = jnp.float32 if out_dtype is None else out_dtype

    # Fold BN1 into layer 2 and BN2 into layer 3 (exact in eval mode), in f32.
    w1, b1 = params["w1"], params["b1"]
    w2f, b2f = _fold_bn_into_next_linear(
        params["g1"], params["beta1"], params["m1"], params["v1"],
        params["w2"], params["b2"])
    w3f, b3f = _fold_bn_into_next_linear(
        params["g2"], params["beta2"], params["m2"], params["v2"],
        params["w3"], params["b3"])

    # Pad layer-3 output channels to a lane multiple (zero columns give
    # sigmoid(0)=0.5 garbage that is sliced off below).
    if Dout_p != Dout:
        w3f = jnp.pad(w3f, ((0, 0), (0, Dout_p - Dout)))
        b3f = jnp.pad(b3f, (0, Dout_p - Dout))

    approx_sigmoid = False
    if compute_dtype is not None:
        x = x.astype(compute_dtype)
        w1 = w1.astype(compute_dtype)
        w2f = w2f.astype(compute_dtype)
        w3f = w3f.astype(compute_dtype)
        approx_sigmoid = jnp.dtype(compute_dtype).itemsize < 4

    # Biases as (1, H) f32 rows so they broadcast over the batch tile in-kernel.
    b1_2d = b1.reshape(1, H1).astype(jnp.float32)
    b2_2d = b2f.reshape(1, H2).astype(jnp.float32)
    b3_2d = b3f.reshape(1, Dout_p).astype(jnp.float32)

    in_itemsize = jnp.dtype(x.dtype).itemsize
    out_itemsize = jnp.dtype(out_dtype).itemsize
    # Sublane packing: f32 -> 8 rows, bf16 -> 16, 8-bit -> 32.
    pack = {4: 8, 2: 16, 1: 32}.get(in_itemsize, 8)

    # Batch tile: no wrapper-side padding of x (Pallas masks the boundary
    # block).  Aim for >= 2 grid steps so v7x can shard across its 2 TCs.
    block_batch = max(pack, (block_batch // pack) * pack)
    tb = max(pack, _round_up(pl.cdiv(B, 2), pack))
    tb = min(tb, block_batch, _round_up(B, pack))
    # Shrink the tile until the working set fits a generation-safe budget.
    while tb > pack and _vmem_bytes(tb, Din, Dout_p, in_itemsize, out_itemsize,
                                    x_buffers, 1) > _VMEM_BUDGET:
        tb = max(pack, _round_up(tb // 2, pack))
    grid = (pl.cdiv(B, tb),)

    need = _vmem_bytes(tb, Din, Dout_p, in_itemsize, out_itemsize,
                       x_buffers, 1)
    vmem_limit = int(min(max(need * 3 // 2, 32 * _MIB), 64 * _MIB))

    cost = pl.CostEstimate(
        flops=2 * B * (Din * H1 + H1 * H2 + H2 * Dout_p),
        transcendentals=B * Dout_p,
        bytes_accessed=(B * Din + Din * H1 + H1 * H2 + H2 * Dout_p)
        * in_itemsize + (H1 + H2 + Dout_p) * 4 + B * Dout_p * out_itemsize,
    )

    args = (x, w1, b1_2d, w2f, b2_2d, w3f, b3_2d)
    kwargs = dict(tb=tb, grid=grid, din=Din, dout_p=Dout_p,
                  out_dtype=out_dtype, approx_sigmoid=approx_sigmoid,
                  x_buffers=x_buffers, vmem_limit=vmem_limit, cost=cost)
    try:
        out = _build_and_run(args, use_pipeline_modes=True, **kwargs)
    except Exception:
        # pipeline_mode / pl.Buffered(1) not supported on this jax version:
        # fall back to default double-buffering (identical numerics).
        out = _build_and_run(args, use_pipeline_modes=False, **kwargs)

    return out[:, :Dout] if Dout_p != Dout else out


# ----------------------------- reference & test -----------------------------

def _ref_forward(x, p):
    hp = jax.lax.Precision.HIGHEST
    h = jnp.maximum(jnp.dot(x, p["w1"], precision=hp) + p["b1"], 0.0)
    h = (h - p["m1"]) / jnp.sqrt(p["v1"] + BN_EPS) * p["g1"] + p["beta1"]
    # Dropout(0.3): identity in eval mode
    h = jnp.maximum(jnp.dot(h, p["w2"], precision=hp) + p["b2"], 0.0)
    h = (h - p["m2"]) / jnp.sqrt(p["v2"] + BN_EPS) * p["g2"] + p["beta2"]
    return jax.nn.sigmoid(jnp.dot(h, p["w3"], precision=hp) + p["b3"])


def _init_linear(key, fin, fout):
    kw, kb = jax.random.split(key)
    bound = 1.0 / (fin ** 0.5)
    w = jax.random.uniform(kw, (fin, fout), minval=-bound, maxval=bound,
                           dtype=jnp.float32)
    b = jax.random.uniform(kb, (fout,), minval=-bound, maxval=bound,
                           dtype=jnp.float32)
    return w, b


if __name__ == "__main__":
    key = jax.random.PRNGKey(0)
    ks = jax.random.split(key, 13)

    batch, num_inputs, num_outputs = 8, 32, 16

    x = jax.random.normal(ks[0], (batch, num_inputs), dtype=jnp.float32)
    w1, b1 = _init_linear(ks[1], num_inputs, H1)
    w2, b2 = _init_linear(ks[2], H1, H2)
    w3, b3 = _init_linear(ks[3], H2, num_outputs)

    # Non-trivial BatchNorm1d parameters / running stats (eval mode).
    params = dict(
        w1=w1, b1=b1, w2=w2, b2=b2, w3=w3, b3=b3,
        g1=jax.random.uniform(ks[4], (H1,), minval=0.5, maxval=1.5),
        beta1=0.1 * jax.random.normal(ks[5], (H1,)),
        m1=0.1 * jax.random.normal(ks[6], (H1,)),
        v1=jax.random.uniform(ks[7], (H1,), minval=0.5, maxval=1.5),
        g2=jax.random.uniform(ks[8], (H2,), minval=0.5, maxval=1.5),
        beta2=0.1 * jax.random.normal(ks[9], (H2,)),
        m2=0.1 * jax.random.normal(ks[10], (H2,)),
        v2=jax.random.uniform(ks[11], (H2,), minval=0.5, maxval=1.5),
    )

    # Tolerance is set to absorb differences in MXU f32 pass count between the
    # Pallas matmuls and the XLA reference; structural errors are orders of
    # magnitude larger than this (outputs are post-sigmoid in (0, 1)).
    tol = 2e-3

    # Check 1: exact-divisibility path (single grid step).
    out = jax.block_until_ready(dnn_forward(x, params))
    ref = _ref_forward(x, params)
    assert out.shape == (batch, num_outputs)
    assert jnp.allclose(out, ref, atol=tol, rtol=tol), (
        float(jnp.max(jnp.abs(out - ref))))

    # Check 2: non-divisible batch exercises the masked boundary block and a
    # multi-step "parallel" grid (no wrapper-side padding of x).
    x2 = jax.random.normal(ks[12], (19, num_inputs), dtype=jnp.float32)
    out2 = jax.block_until_ready(dnn_forward(x2, params, block_batch=8))
    ref2 = _ref_forward(x2, params)
    assert out2.shape == (19, num_outputs)
    assert jnp.allclose(out2, ref2, atol=tol, rtol=tol), (
        float(jnp.max(jnp.abs(out2 - ref2))))

    print("KERNEL_OK")
</pallas_src>

<mosaic_0001>
module attributes {stable_mosaic.version = 11 : i64} {
  func.func @dnn_kernel(%arg0: i32, %arg1: memref<8x32xf32, #tpu.memory_space<vmem>>, %arg2: memref<32x512xf32, #tpu.memory_space<vmem>>, %arg3: memref<1x512xf32, #tpu.memory_space<vmem>>, %arg4: memref<512x256xf32, #tpu.memory_space<vmem>>, %arg5: memref<1x256xf32, #tpu.memory_space<vmem>>, %arg6: memref<256x128xf32, #tpu.memory_space<vmem>>, %arg7: memref<1x128xf32, #tpu.memory_space<vmem>>, %arg8: memref<8x128xf32, #tpu.memory_space<vmem>>) attributes {dimension_semantics = [#tpu.dimension_semantics<parallel>], iteration_bounds = array<i64: 1>, scalar_prefetch = 0 : i64, scratch_operands = 0 : i64, tpu.core_type = #tpu.core_type<tc>, window_params = [{transform_indices = @transform_0, window_bounds = array<i64: 8, 32>}, {pipeline_mode = #tpu.pipeline_mode<synchronous>, transform_indices = @transform_1, window_bounds = array<i64: 32, 512>}, {pipeline_mode = #tpu.pipeline_mode<synchronous>, transform_indices = @transform_2, window_bounds = array<i64: 1, 512>}, {pipeline_mode = #tpu.pipeline_mode<synchronous>, transform_indices = @transform_3, window_bounds = array<i64: 512, 256>}, {pipeline_mode = #tpu.pipeline_mode<synchronous>, transform_indices = @transform_4, window_bounds = array<i64: 1, 256>}, {pipeline_mode = #tpu.pipeline_mode<synchronous>, transform_indices = @transform_5, window_bounds = array<i64: 256, 128>}, {pipeline_mode = #tpu.pipeline_mode<synchronous>, transform_indices = @transform_6, window_bounds = array<i64: 1, 128>}, {transform_indices = @transform_7, window_bounds = array<i64: 8, 128>}]} {
    %c0 = arith.constant 0 : index
    %c0_0 = arith.constant 0 : index
    %0 = vector.load %arg1[%c0, %c0_0] : memref<8x32xf32, #tpu.memory_space<vmem>>, vector<8x32xf32>
    %c0_1 = arith.constant 0 : index
    %c0_2 = arith.constant 0 : index
    %1 = vector.load %arg2[%c0_1, %c0_2] : memref<32x512xf32, #tpu.memory_space<vmem>>, vector<32x512xf32>
    %cst = arith.constant dense<0.000000e+00> : vector<8x512xf32>
    %2 = tpu.matmul %0, %1, %cst {dimension_numbers = #tpu.dot_dimension_numbers<[1], [0], [0], [1], [0, 0, 1, 1], [], []>} : vector<8x32xf32>, vector<32x512xf32>, vector<8x512xf32> -> vector<8x512xf32>
    %c0_3 = arith.constant 0 : index
    %c0_4 = arith.constant 0 : index
    %3 = vector.load %arg3[%c0_3, %c0_4] : memref<1x512xf32, #tpu.memory_space<vmem>>, vector<1x512xf32>
    %4 = vector.broadcast %3 : vector<1x512xf32> to vector<8x512xf32>
    %5 = arith.addf %2, %4 : vector<8x512xf32>
    %cst_5 = arith.constant 0.000000e+00 : f32
    %6 = vector.broadcast %cst_5 : f32 to vector<8x512xf32>
    %7 = arith.maximumf %5, %6 : vector<8x512xf32>
    %c0_6 = arith.constant 0 : index
    %c0_7 = arith.constant 0 : index
    %8 = vector.load %arg4[%c0_6, %c0_7] : memref<512x256xf32, #tpu.memory_space<vmem>>, vector<512x256xf32>
    %cst_8 = arith.constant dense<0.000000e+00> : vector<8x256xf32>
    %9 = tpu.matmul %7, %8, %cst_8 {dimension_numbers = #tpu.dot_dimension_numbers<[1], [0], [0], [1], [0, 0, 1, 1], [], []>} : vector<8x512xf32>, vector<512x256xf32>, vector<8x256xf32> -> vector<8x256xf32>
    %c0_9 = arith.constant 0 : index
    %c0_10 = arith.constant 0 : index
    %10 = vector.load %arg5[%c0_9, %c0_10] : memref<1x256xf32, #tpu.memory_space<vmem>>, vector<1x256xf32>
    %11 = vector.broadcast %10 : vector<1x256xf32> to vector<8x256xf32>
    %12 = arith.addf %9, %11 : vector<8x256xf32>
    %cst_11 = arith.constant 0.000000e+00 : f32
    %13 = vector.broadcast %cst_11 : f32 to vector<8x256xf32>
    %14 = arith.maximumf %12, %13 : vector<8x256xf32>
    %c0_12 = arith.constant 0 : index
    %c0_13 = arith.constant 0 : index
    %15 = vector.load %arg6[%c0_12, %c0_13] : memref<256x128xf32, #tpu.memory_space<vmem>>, vector<256x128xf32>
    %cst_14 = arith.constant dense<0.000000e+00> : vector<8x128xf32>
    %16 = tpu.matmul %14, %15, %cst_14 {dimension_numbers = #tpu.dot_dimension_numbers<[1], [0], [0], [1], [0, 0, 1, 1], [], []>} : vector<8x256xf32>, vector<256x128xf32>, vector<8x128xf32> -> vector<8x128xf32>
    %c0_15 = arith.constant 0 : index
    %c0_16 = arith.constant 0 : index
    %17 = vector.load %arg7[%c0_15, %c0_16] : memref<1x128xf32, #tpu.memory_space<vmem>>, vector<1x128xf32>
    %18 = vector.broadcast %17 : vector<1x128xf32> to vector<8x128xf32>
    %19 = arith.addf %16, %18 : vector<8x128xf32>
    %20 = arith.negf %19 : vector<8x128xf32>
    %21 = math.exp %20 : vector<8x128xf32>
    %cst_17 = arith.constant 1.000000e+00 : f32
    %22 = vector.broadcast %cst_17 : f32 to vector<8x128xf32>
    %23 = arith.addf %22, %21 : vector<8x128xf32>
    %24 = arith.divf %22, %23 : vector<8x128xf32>
    %c0_18 = arith.constant 0 : index
    %c0_19 = arith.constant 0 : index
    %25 = vector.load %arg8[%c0_18, %c0_19] : memref<8x128xf32, #tpu.memory_space<vmem>>, vector<8x128xf32>
    tpu.vector_store %arg8[%c0_18, %c0_19], %24 {strides = array<i32>} : memref<8x128xf32, #tpu.memory_space<vmem>>, vector<8x128xf32>,
    return
  }
  func.func @transform_0(%arg0: i32) -> (i32, i32) {
    %c0_i32 = arith.constant 0 : i32
    %c0_i32_0 = arith.constant 0 : i32
    return %arg0, %c0_i32 : i32, i32
  }
  func.func @transform_1(%arg0: i32) -> (i32, i32) {
    %c0_i32 = arith.constant 0 : i32
    %c0_i32_0 = arith.constant 0 : i32
    %c0_i32_1 = arith.constant 0 : i32
    return %c0_i32, %c0_i32_0 : i32, i32
  }
  func.func @transform_2(%arg0: i32) -> (i32, i32) {
    %c0_i32 = arith.constant 0 : i32
    %c0_i32_0 = arith.constant 0 : i32
    %c0_i32_1 = arith.constant 0 : i32
    return %c0_i32, %c0_i32_0 : i32, i32
  }
  func.func @transform_3(%arg0: i32) -> (i32, i32) {
    %c0_i32 = arith.constant 0 : i32
    %c0_i32_0 = arith.constant 0 : i32
    %c0_i32_1 = arith.constant 0 : i32
    return %c0_i32, %c0_i32_0 : i32, i32
  }
  func.func @transform_4(%arg0: i32) -> (i32, i32) {
    %c0_i32 = arith.constant 0 : i32
    %c0_i32_0 = arith.constant 0 : i32
    %c0_i32_1 = arith.constant 0 : i32
    return %c0_i32, %c0_i32_0 : i32, i32
  }
  func.func @transform_5(%arg0: i32) -> (i32, i32) {
    %c0_i32 = arith.constant 0 : i32
    %c0_i32_0 = arith.constant 0 : i32
    %c0_i32_1 = arith.constant 0 : i32
    return %c0_i32, %c0_i32_0 : i32, i32
  }
  func.func @transform_6(%arg0: i32) -> (i32, i32) {
    %c0_i32 = arith.constant 0 : i32
    %c0_i32_0 = arith.constant 0 : i32
    %c0_i32_1 = arith.constant 0 : i32
    return %c0_i32, %c0_i32_0 : i32, i32
  }
  func.func @transform_7(%arg0: i32) -> (i32, i32) {
    %c0_i32 = arith.constant 0 : i32
    %c0_i32_0 = arith.constant 0 : i32
    return %arg0, %c0_i32 : i32, i32
  }
}

module attributes {stable_mosaic.version = 11 : i64} {
  func.func @dnn_kernel(%arg0: i32, %arg1: memref<8x32xf32, #tpu.memory_space<vmem>>, %arg2: memref<32x512xf32, #tpu.memory_space<vmem>>, %arg3: memref<1x512xf32, #tpu.memory_space<vmem>>, %arg4: memref<512x256xf32, #tpu.memory_space<vmem>>, %arg5: memref<1x256xf32, #tpu.memory_space<vmem>>, %arg6: memref<256x128xf32, #tpu.memory_space<vmem>>, %arg7: memref<1x128xf32, #tpu.memory_space<vmem>>, %arg8: memref<8x128xf32, #tpu.memory_space<vmem>>) attributes {dimension_semantics = [#tpu.dimension_semantics<parallel>], iteration_bounds = array<i64: 1>, scalar_prefetch = 0 : i64, scratch_operands = 0 : i64, tpu.core_type = #tpu.core_type<tc>, window_params = [{transform_indices = @transform_0, window_bounds = array<i64: 8, 32>}, {pipeline_mode = #tpu.pipeline_mode<synchronous>, transform_indices = @transform_1, window_bounds = array<i64: 32, 512>}, {pipeline_mode = #tpu.pipeline_mode<synchronous>, transform_indices = @transform_2, window_bounds = array<i64: 1, 512>}, {pipeline_mode = #tpu.pipeline_mode<synchronous>, transform_indices = @transform_3, window_bounds = array<i64: 512, 256>}, {pipeline_mode = #tpu.pipeline_mode<synchronous>, transform_indices = @transform_4, window_bounds = array<i64: 1, 256>}, {pipeline_mode = #tpu.pipeline_mode<synchronous>, transform_indices = @transform_5, window_bounds = array<i64: 256, 128>}, {pipeline_mode = #tpu.pipeline_mode<synchronous>, transform_indices = @transform_6, window_bounds = array<i64: 1, 128>}, {transform_indices = @transform_7, window_bounds = array<i64: 8, 128>}]} {
    %c0 = arith.constant 0 : index
    %c0_0 = arith.constant 0 : index
    %0 = vector.load %arg1[%c0, %c0_0] : memref<8x32xf32, #tpu.memory_space<vmem>>, vector<8x32xf32>
    %c0_1 = arith.constant 0 : index
    %c0_2 = arith.constant 0 : index
    %1 = vector.load %arg2[%c0_1, %c0_2] : memref<32x512xf32, #tpu.memory_space<vmem>>, vector<32x512xf32>
    %cst = arith.constant dense<0.000000e+00> : vector<8x512xf32>
    %2 = tpu.matmul %0, %1, %cst {dimension_numbers = #tpu.dot_dimension_numbers<[1], [0], [0], [1], [0, 0, 1, 1], [], []>} : vector<8x32xf32>, vector<32x512xf32>, vector<8x512xf32> -> vector<8x512xf32>
    %c0_3 = arith.constant 0 : index
    %c0_4 = arith.constant 0 : index
    %3 = vector.load %arg3[%c0_3, %c0_4] : memref<1x512xf32, #tpu.memory_space<vmem>>, vector<1x512xf32>
    %4 = vector.broadcast %3 : vector<1x512xf32> to vector<8x512xf32>
    %5 = arith.addf %2, %4 : vector<8x512xf32>
    %cst_5 = arith.constant 0.000000e+00 : f32
    %6 = vector.broadcast %cst_5 : f32 to vector<8x512xf32>
    %7 = arith.maximumf %5, %6 : vector<8x512xf32>
    %c0_6 = arith.constant 0 : index
    %c0_7 = arith.constant 0 : index
    %8 = vector.load %arg4[%c0_6, %c0_7] : memref<512x256xf32, #tpu.memory_space<vmem>>, vector<512x256xf32>
    %cst_8 = arith.constant dense<0.000000e+00> : vector<8x256xf32>
    %9 = tpu.matmul %7, %8, %cst_8 {dimension_numbers = #tpu.dot_dimension_numbers<[1], [0], [0], [1], [0, 0, 1, 1], [], []>} : vector<8x512xf32>, vector<512x256xf32>, vector<8x256xf32> -> vector<8x256xf32>
    %c0_9 = arith.constant 0 : index
    %c0_10 = arith.constant 0 : index
    %10 = vector.load %arg5[%c0_9, %c0_10] : memref<1x256xf32, #tpu.memory_space<vmem>>, vector<1x256xf32>
    %11 = vector.broadcast %10 : vector<1x256xf32> to vector<8x256xf32>
    %12 = arith.addf %9, %11 : vector<8x256xf32>
    %cst_11 = arith.constant 0.000000e+00 : f32
    %13 = vector.broadcast %cst_11 : f32 to vector<8x256xf32>
    %14 = arith.maximumf %12, %13 : vector<8x256xf32>
    %c0_12 = arith.constant 0 : index
    %c0_13 = arith.constant 0 : index
    %15 = vector.load %arg6[%c0_12, %c0_13] : memref<256x128xf32, #tpu.memory_space<vmem>>, vector<256x128xf32>
    %cst_14 = arith.constant dense<0.000000e+00> : vector<8x128xf32>
    %16 = tpu.matmul %14, %15, %cst_14 {dimension_numbers = #tpu.dot_dimension_numbers<[1], [0], [0], [1], [0, 0, 1, 1], [], []>} : vector<8x256xf32>, vector<256x128xf32>, vector<8x128xf32> -> vector<8x128xf32>
    %c0_15 = arith.constant 0 : index
    %c0_16 = arith.constant 0 : index
    %17 = vector.load %arg7[%c0_15, %c0_16] : memref<1x128xf32, #tpu.memory_space<vmem>>, vector<1x128xf32>
    %18 = vector.broadcast %17 : vector<1x128xf32> to vector<8x128xf32>
    %19 = arith.addf %16, %18 : vector<8x128xf32>
    %20 = arith.negf %19 : vector<8x128xf32>
    %21 = math.exp %20 : vector<8x128xf32>
    %cst_17 = arith.constant 1.000000e+00 : f32
    %22 = vector.broadcast %cst_17 : f32 to vector<8x128xf32>
    %23 = arith.addf %22, %21 : vector<8x128xf32>
    %24 = arith.divf %22, %23 : vector<8x128xf32>
    %c0_18 = arith.constant 0 : index
    %c0_19 = arith.constant 0 : index
    %25 = vector.load %arg8[%c0_18, %c0_19] : memref<8x128xf32, #tpu.memory_space<vmem>>, vector<8x128xf32>
    tpu.vector_store %arg8[%c0_18, %c0_19], %24 {strides = array<i32>} : memref<8x128xf32, #tpu.memory_space<vmem>>, vector<8x128xf32>,
    return
  }
  func.func @transform_0(%arg0: i32) -> (i32, i32) {
    %c0_i32 = arith.constant 0 : i32
    %c0_i32_0 = arith.constant 0 : i32
    return %arg0, %c0_i32 : i32, i32
  }
  func.func @transform_1(%arg0: i32) -> (i32, i32) {
    %c0_i32 = arith.constant 0 : i32
    %c0_i32_0 = arith.constant 0 : i32
    %c0_i32_1 = arith.constant 0 : i32
    return %c0_i32, %c0_i32_0 : i32, i32
  }
  func.func @transform_2(%arg0: i32) -> (i32, i32) {
    %c0_i32 = arith.constant 0 : i32
    %c0_i32_0 = arith.constant 0 : i32
    %c0_i32_1 = arith.constant 0 : i32
    return %c0_i32, %c0_i32_0 : i32, i32
  }
  func.func @transform_3(%arg0: i32) -> (i32, i32) {
    %c0_i32 = arith.constant 0 : i32
    %c0_i32_0 = arith.constant 0 : i32
    %c0_i32_1 = arith.constant 0 : i32
    return %c0_i32, %c0_i32_0 : i32, i32
  }
  func.func @transform_4(%arg0: i32) -> (i32, i32) {
    %c0_i32 = arith.constant 0 : i32
    %c0_i32_0 = arith.constant 0 : i32
    %c0_i32_1 = arith.constant 0 : i32
    return %c0_i32, %c0_i32_0 : i32, i32
  }
  func.func @transform_5(%arg0: i32) -> (i32, i32) {
    %c0_i32 = arith.constant 0 : i32
    %c0_i32_0 = arith.constant 0 : i32
    %c0_i32_1 = arith.constant 0 : i32
    return %c0_i32, %c0_i32_0 : i32, i32
  }
  func.func @transform_6(%arg0: i32) -> (i32, i32) {
    %c0_i32 = arith.constant 0 : i32
    %c0_i32_0 = arith.constant 0 : i32
    %c0_i32_1 = arith.constant 0 : i32
    return %c0_i32, %c0_i32_0 : i32, i32
  }
  func.func @transform_7(%arg0: i32) -> (i32, i32) {
    %c0_i32 = arith.constant 0 : i32
    %c0_i32_0 = arith.constant 0 : i32
    return %arg0, %c0_i32 : i32, i32
  }
}

</mosaic_0001>

<bundles_post_ra>
// kernel: tpu_custom_call.1
= control target key start
LH: loop header
LB: loop body
LE: loop exit
PB: predicated region body
PF: predicated region fallthrough
CT: control target
= control target key end

     0   :  { %12 = vsyncpa [#allocation3], 0  ;;  %s881_s0 = inlined_call_operand.hbm [shape: f32[8,32], index: 0, kind: input, shape index: {}]   ;;  %s882_s1 = inlined_call_operand.hbm [shape: f32[32,512], index: 1, kind: input, shape index: {}]   ;;  %s883_s2 = inlined_call_operand.hbm [shape: f32[1,512], index: 2, kind: input, shape index: {}]   ;;  %s884_s3 = inlined_call_operand.hbm [shape: f32[512,256], index: 3, kind: input, shape index: {}]   ;;  %s885_s4 = inlined_call_operand.vmem [shape: f32[1,256], index: 4, kind: input, shape index: {}]   ;;  %s886_s5 = inlined_call_operand.hbm [shape: f32[256,128], index: 5, kind: input, shape index: {}]   ;;  %s887_s6 = inlined_call_operand.vmem [shape: f32[1,128], index: 6, kind: input, shape index: {}]   ;;  %s888_s7 = inlined_call_operand.hbm [shape: f32[8,128], index: 7, kind: output, shape index: {}]  }
   0x1   :  { %13 = vsyncpa [#allocation6], 0 }
   0x2   :  { %14 = vsyncpa [#allocation9], 0  ;;  %s31_s26 = sshll.u32 %s882_s1, 4  ;;  %s32_s26 = int_to_ptr.hbm [resolvable:$true] %s31_s26 }
   0x3   :  { %15 = vsyncpa [#allocation4], 0  ;;  %s801_s27 = smov [#allocation5]   ;;  %s55_s8 = sshll.u32 %s884_s3, 4  ;;  %s56_s8 = int_to_ptr.hbm [resolvable:$true] %s55_s8 }
   0x4   :  { %s33_s28 = sshll.u32 %s801_s27, 4  ;;  %s802_s9 = smov 512   ;;  %s34_s28 = int_to_ptr.vmem [resolvable:$true] %s33_s28 }
   0x5   :  { %s803_s10 = smov 32   ;;  %s804_s11 = smov [#allocation8]  }
   0x6   :  { %39 = dma.hbm_to_vmem [thread:$0]  %s32_s26, 2048, %s34_s28, [#allocation6], %s802_s9, %s802_s9, %s803_s10  }
   0x7   :  { %s57_s12 = sshll.u32 %s804_s11, 4  ;;  %s805_s13 = smov 256   ;;  %s58_s12 = int_to_ptr.vmem [resolvable:$true] %s57_s12 }
   0x8   :  { %s806_s14 = smov 16   ;;  %s21_s16 = sshll.u32 %s881_s0, 4  ;;  %s22_s16 = int_to_ptr.hbm [resolvable:$true] %s21_s16 }
   0x9   :  { %63 = dma.hbm_to_vmem [thread:$0]  %s56_s8, 16384, %s58_s12, [#allocation9], %s805_s13, %s805_s13, %s806_s14  }
   0xa   :  { %s807_s17 = smov [#allocation2]   ;;  %s45_s20 = sshll.u32 %s883_s2, 4  ;;  %s46_s20 = int_to_ptr.hbm [resolvable:$true] %s45_s20 }
   0xb   :  { %s23_s18 = sshll.u32 %s807_s17, 4  ;;  %s808_s21 = smov [#allocation7]   ;;  %s24_s18 = int_to_ptr.vmem [resolvable:$true] %s23_s18 }
   0xc   :  { %26 = dma.hbm_to_vmem [thread:$0]  %s22_s16, 128, %s24_s18, [#allocation3]  }
   0xd   :  { %s47_s22 = sshll.u32 %s808_s21, 4  ;;  %s70_s25 = sshll.u32 %s886_s5, 4  ;;  %s48_s22 = int_to_ptr.vmem [resolvable:$true] %s47_s22  ;;  %s71_s25 = int_to_ptr.hbm [resolvable:$true] %s70_s25 }
   0xe   :  { %50 = dma.hbm_to_vmem [thread:$0]  %s46_s20, 64, %s48_s22, [#allocation6]  }
   0xf   :  { %s809_s0 = smov [#allocation10]   ;;  %s810_s27 = smov 128  }
  0x10   :  { %s72_s26 = sshll.u32 %s809_s0, 4  ;;  %s811_s28 = smov 8   ;;  %s73_s26 = int_to_ptr.vmem [resolvable:$true] %s72_s26 }
  0x11   :  { %78 = dma.hbm_to_vmem [thread:$0]  %s71_s25, 4096, %s73_s26, [#allocation9], %s810_s27, %s810_s27, %s811_s28  }
  0x12   :  { %793 = dma.done.wait [#allocation3], 128  }
  0x13   :  { %794 = vsyncadd [#allocation3], 4294967168 }
  0x14   :  { %795 = dma.done.wait [#allocation6], 2112  }
  0x15   :  { %796 = vsyncadd [#allocation6], 4294965184 }
  0x16   :  { %797 = dma.done.wait [#allocation9], 20480  }
  0x17   :  { %798 = vsyncadd [#allocation9], 4294946816  ;;  %v114_v0 = vld [vmem:[#allocation5 + $0x60] sm:$0xff]  ;;  %v115_v1 = vld [vmem:[#allocation5 + $0x68] sm:$0xff]  ;;  %vm128_vm0 = vcmask 261120   ;;  %s812_s30 = smov [#allocation11]  }
  0x18   :  { %v110_v2 = vld [vmem:[#allocation5 + $0x40] sm:$0xff]  ;;  %144 = vmatpush.msra.mxu2 %v114_v0  ;;  %164 = vmatpush.msra.mxu3 %v115_v1  ;;  %v111_v3 = vld [vmem:[#allocation5 + $0x48] sm:$0xff]  ;;  %v101_v8 = vld [vmem:[#allocation2] sm:$0xff]  ;;  %s613_s8 = sshll.u32 %s812_s30, 4  ;;  %s615_s10 = sshll.u32 %s888_s7, 4  ;;  %s614_s8 = int_to_ptr.vmem [resolvable:$true] %s613_s8  ;;  %s616_s10 = int_to_ptr.hbm [resolvable:$true] %s615_s10 }
  0x19   :  { %v106_v4 = vld [vmem:[#allocation5 + $0x20] sm:$0xff]  ;;  %v107_v5 = vld [vmem:[#allocation5 + $0x28] sm:$0xff]  ;;  %v246_v9 = vld [vmem:[#allocation8 + $0xf0] sm:$0xff] }
  0x1a   :  { %145 = vmatpush.msra.mxu2 %v110_v2  ;;  %165 = vmatpush.msra.mxu3 %v111_v3  ;;  %v102_v6 = vld [vmem:[#allocation5] sm:$0xff]  ;;  %v103_v7 = vld [vmem:[#allocation5 + $0x8] sm:$0xff]  ;;  %v116_v10 = vld [vmem:[#allocation5 + $0x70] sm:$0xff] }
  0x1b   :  { %v117_v11 = vld [vmem:[#allocation5 + $0x78] sm:$0xff]  ;;  %350 = vmatpush.msra.mxu0 %v246_v9  ;;  %v244_v13 = vld [vmem:[#allocation8 + $0xe0] sm:$0xff]  ;;  %v112_v14 = vld [vmem:[#allocation5 + $0x50] sm:$0xff] }
  0x1c   :  { %146 = vmatpush.msra.mxu2 %v106_v4  ;;  %166 = vmatpush.msra.mxu3 %v107_v5  ;;  %v278_v12 = vld [vmem:[#allocation8 + $0x1f0] sm:$0xff]  ;;  %v276_v16 = vld [vmem:[#allocation8 + $0x1e0] sm:$0xff]  ;;  %v247_v9 = vld [vmem:[#allocation8 + $0xf8] sm:$0xff] }
  0x1d   :  { %v113_v15 = vld [vmem:[#allocation5 + $0x58] sm:$0xff]  ;;  %v108_v18 = vld [vmem:[#allocation5 + $0x30] sm:$0xff]  ;;  %370 = vmatpush.msra.mxu1 %v278_v12  ;;  %351 = vmatpush.msra.mxu0 %v244_v13  ;;  %v240_v21 = vld [vmem:[#allocation8 + $0xc0] sm:$0xff] }
  0x1e   :  { %147 = vmatpush.msra.mxu2 %v102_v6  ;;  %167 = vmatpush.msra.mxu3 %v103_v7  ;;  %v242_v17 = vld [vmem:[#allocation8 + $0xd0] sm:$0xff]  ;;  %v272_v24 = vld [vmem:[#allocation8 + $0x1c0] sm:$0xff]  ;;  %v245_v13 = vld [vmem:[#allocation8 + $0xe8] sm:$0xff] }
  0x1f   :  { %627 = vmatmul.msk.f32.vlgmr.msra.gmra.mxu2 %vm128_vm0, %v101_v8  ;;  %628 = vmatmul.msk.f32.vlgmr.msra.gmra.mxu3 %vm128_vm0, %v101_v8  ;;  %v109_v19 = vld [vmem:[#allocation5 + $0x38] sm:$0xff]  ;;  %v104_v22 = vld [vmem:[#allocation5 + $0x10] sm:$0xff]  ;;  %v236_v29 = vld [vmem:[#allocation8 + $0xa0] sm:$0xff] }
  0x20   :  { %184 = vmatpush.msrb.mxu2 %v116_v10  ;;  %204 = vmatpush.msrb.mxu3 %v117_v11  ;;  %v274_v20 = vld [vmem:[#allocation8 + $0x1d0] sm:$0xff]  ;;  %v308_v30 = vld [vmem:[#allocation8 + $0x2e0] sm:$0xff]  ;;  %v279_v10 = vld [vmem:[#allocation8 + $0x1f8] sm:$0xff] }
  0x21   :  { %v105_v23 = vld [vmem:[#allocation5 + $0x18] sm:$0xff]  ;;  %371 = vmatpush.msra.mxu1 %v276_v16  ;;  %352 = vmatpush.msra.mxu0 %v242_v17  ;;  %v340_v31 = vld [vmem:[#allocation8 + $0x3e0] sm:$0xff] }
  0x22   :  { %185 = vmatpush.msrb.mxu2 %v112_v14  ;;  %205 = vmatpush.msrb.mxu3 %v113_v15  ;;  %v238_v25 = vld [vmem:[#allocation8 + $0xb0] sm:$0xff]  ;;  %v268_v32 = vld [vmem:[#allocation8 + $0x1a0] sm:$0xff]  ;;  %v277_v14 = vld [vmem:[#allocation8 + $0x1e8] sm:$0xff] }
  0x23   :  { %372 = vmatpush.msra.mxu1 %v274_v20  ;;  %353 = vmatpush.msra.mxu0 %v240_v21  ;;  %v310_v26 = vld [vmem:[#allocation8 + $0x2f0] sm:$0xff]  ;;  %v232_v37 = vld [vmem:[#allocation8 + $0x80] sm:$0xff]  ;;  %v243_v17 = vld [vmem:[#allocation8 + $0xd8] sm:$0xff] }
  0x24   :  { %186 = vmatpush.msrb.mxu2 %v108_v18  ;;  %206 = vmatpush.msrb.mxu3 %v109_v19  ;;  %v342_v27 = vld [vmem:[#allocation8 + $0x3f0] sm:$0xff]  ;;  %v304_v38 = vld [vmem:[#allocation8 + $0x2c0] sm:$0xff]  ;;  %v275_v18 = vld [vmem:[#allocation8 + $0x1d8] sm:$0xff] }
  0x25   :  { %v270_v28 = vld [vmem:[#allocation8 + $0x1b0] sm:$0xff]  ;;  %373 = vmatpush.msra.mxu1 %v272_v24  ;;  %354 = vmatpush.msra.mxu0 %v238_v25  ;;  %v336_v39 = vld [vmem:[#allocation8 + $0x3c0] sm:$0xff]  ;;  %v241_v21 = vld [vmem:[#allocation8 + $0xc8] sm:$0xff] }
  0x26   :  { %187 = vmatpush.msrb.mxu2 %v104_v22  ;;  %207 = vmatpush.msrb.mxu3 %v105_v23  ;;  %v234_v33 = vld [vmem:[#allocation8 + $0x90] sm:$0xff]  ;;  %v264_v40 = vld [vmem:[#allocation8 + $0x180] sm:$0xff]  ;;  %v273_v22 = vld [vmem:[#allocation8 + $0x1c8] sm:$0xff] }
  0x27   :  { %629 = vmatmul.msk.f32.vlgmr.msrb.gmra.mxu2 %vm128_vm0, %v101_v8  ;;  %630 = vmatmul.msk.f32.vlgmr.msrb.gmra.mxu3 %vm128_vm0, %v101_v8  ;;  %v306_v34 = vld [vmem:[#allocation8 + $0x2d0] sm:$0xff]  ;;  %v228_v45 = vld [vmem:[#allocation8 + $0x60] sm:$0xff]  ;;  %v239_v25 = vld [vmem:[#allocation8 + $0xb8] sm:$0xff] }
  0x28   :  { %390 = vmatpush.msra.mxu2 %v310_v26  ;;  %410 = vmatpush.msra.mxu3 %v342_v27  ;;  %v338_v35 = vld [vmem:[#allocation8 + $0x3d0] sm:$0xff]  ;;  %v300_v46 = vld [vmem:[#allocation8 + $0x2a0] sm:$0xff]  ;;  %v271_v26 = vld [vmem:[#allocation8 + $0x1b8] sm:$0xff] }
  0x29   :  { %374 = vmatpush.msra.mxu1 %v270_v28  ;;  %355 = vmatpush.msra.mxu0 %v236_v29  ;;  %v266_v36 = vld [vmem:[#allocation8 + $0x190] sm:$0xff]  ;;  %v332_v47 = vld [vmem:[#allocation8 + $0x3a0] sm:$0xff]  ;;  %v311_v27 = vld [vmem:[#allocation8 + $0x2f8] sm:$0xff] }
  0x2a   :  { %391 = vmatpush.msra.mxu2 %v308_v30  ;;  %411 = vmatpush.msra.mxu3 %v340_v31  ;;  %v230_v41 = vld [vmem:[#allocation8 + $0x70] sm:$0xff]  ;;  %v260_v48 = vld [vmem:[#allocation8 + $0x160] sm:$0xff]  ;;  %v343_v28 = vld [vmem:[#allocation8 + $0x3f8] sm:$0xff] }
  0x2b   :  { %375 = vmatpush.msra.mxu1 %v268_v32  ;;  %356 = vmatpush.msra.mxu0 %v234_v33  ;;  %v302_v42 = vld [vmem:[#allocation8 + $0x2b0] sm:$0xff]  ;;  %v224_v53 = vld [vmem:[#allocation8 + $0x40] sm:$0xff]  ;;  %v237_v29 = vld [vmem:[#allocation8 + $0xa8] sm:$0xff] }
  0x2c   :  { %392 = vmatpush.msra.mxu2 %v306_v34  ;;  %412 = vmatpush.msra.mxu3 %v338_v35  ;;  %v334_v43 = vld [vmem:[#allocation8 + $0x3b0] sm:$0xff]  ;;  %v296_v54 = vld [vmem:[#allocation8 + $0x280] sm:$0xff]  ;;  %v269_v30 = vld [vmem:[#allocation8 + $0x1a8] sm:$0xff] }
  0x2d   :  { %376 = vmatpush.msra.mxu1 %v266_v36  ;;  %357 = vmatpush.msra.mxu0 %v232_v37  ;;  %v262_v44 = vld [vmem:[#allocation8 + $0x170] sm:$0xff]  ;;  %v328_v55 = vld [vmem:[#allocation8 + $0x380] sm:$0xff]  ;;  %v309_v31 = vld [vmem:[#allocation8 + $0x2e8] sm:$0xff] }
  0x2e   :  { %393 = vmatpush.msra.mxu2 %v304_v38  ;;  %413 = vmatpush.msra.mxu3 %v336_v39  ;;  %v226_v49 = vld [vmem:[#allocation8 + $0x50] sm:$0xff]  ;;  %v256_v56 = vld [vmem:[#allocation8 + $0x140] sm:$0xff]  ;;  %v341_v32 = vld [vmem:[#allocation8 + $0x3e8] sm:$0xff] }
  0x2f   :  { %377 = vmatpush.msra.mxu1 %v264_v40  ;;  %358 = vmatpush.msra.mxu0 %v230_v41  ;;  %v298_v50 = vld [vmem:[#allocation8 + $0x290] sm:$0xff]  ;;  %v220_v61 = vld [vmem:[#allocation8 + $0x20] sm:$0xff]  ;;  %v235_v33 = vld [vmem:[#allocation8 + $0x98] sm:$0xff] }
  0x30   :  { %394 = vmatpush.msra.mxu2 %v302_v42  ;;  %414 = vmatpush.msra.mxu3 %v334_v43  ;;  %v330_v51 = vld [vmem:[#allocation8 + $0x390] sm:$0xff]  ;;  %v292_v62 = vld [vmem:[#allocation8 + $0x260] sm:$0xff]  ;;  %v267_v34 = vld [vmem:[#allocation8 + $0x198] sm:$0xff] }
  0x31   :  { %378 = vmatpush.msra.mxu1 %v262_v44  ;;  %359 = vmatpush.msra.mxu0 %v228_v45  ;;  %v258_v52 = vld [vmem:[#allocation8 + $0x150] sm:$0xff]  ;;  %v324_v63 = vld [vmem:[#allocation8 + $0x360] sm:$0xff]  ;;  %v307_v35 = vld [vmem:[#allocation8 + $0x2d8] sm:$0xff] }
  0x32   :  { %395 = vmatpush.msra.mxu2 %v300_v46  ;;  %415 = vmatpush.msra.mxu3 %v332_v47  ;;  %v222_v57 = vld [vmem:[#allocation8 + $0x30] sm:$0xff]  ;;  %v252_v0 = vld [vmem:[#allocation8 + $0x120] sm:$0xff]  ;;  %v339_v36 = vld [vmem:[#allocation8 + $0x3d8] sm:$0xff] }
  0x33   :  { %379 = vmatpush.msra.mxu1 %v260_v48  ;;  %360 = vmatpush.msra.mxu0 %v226_v49  ;;  %v294_v58 = vld [vmem:[#allocation8 + $0x270] sm:$0xff]  ;;  %v216_v5 = vld [vmem:[#allocation8] sm:$0xff]  ;;  %v233_v37 = vld [vmem:[#allocation8 + $0x88] sm:$0xff] }
  0x34   :  { %396 = vmatpush.msra.mxu2 %v298_v50  ;;  %416 = vmatpush.msra.mxu3 %v330_v51  ;;  %v326_v59 = vld [vmem:[#allocation8 + $0x370] sm:$0xff]  ;;  %v288_v6 = vld [vmem:[#allocation8 + $0x240] sm:$0xff]  ;;  %v265_v38 = vld [vmem:[#allocation8 + $0x188] sm:$0xff] }
  0x35   :  { %380 = vmatpush.msra.mxu1 %v258_v52  ;;  %361 = vmatpush.msra.mxu0 %v224_v53  ;;  %v254_v60 = vld [vmem:[#allocation8 + $0x130] sm:$0xff]  ;;  %v320_v7 = vld [vmem:[#allocation8 + $0x340] sm:$0xff]  ;;  %v305_v39 = vld [vmem:[#allocation8 + $0x2c8] sm:$0xff] }
  0x36   :  { %397 = vmatpush.msra.mxu2 %v296_v54  ;;  %417 = vmatpush.msra.mxu3 %v328_v55  ;;  %v218_v1 = vld [vmem:[#allocation8 + $0x10] sm:$0xff]  ;;  %v248_v8 = vld [vmem:[#allocation8 + $0x100] sm:$0xff]  ;;  %v337_v40 = vld [vmem:[#allocation8 + $0x3c8] sm:$0xff] }
  0x37   :  { %381 = vmatpush.msra.mxu1 %v256_v56  ;;  %362 = vmatpush.msra.mxu0 %v222_v57  ;;  %v290_v2 = vld [vmem:[#allocation8 + $0x250] sm:$0xff]  ;;  %v284_v15 = vld [vmem:[#allocation8 + $0x220] sm:$0xff]  ;;  %v231_v41 = vld [vmem:[#allocation8 + $0x78] sm:$0xff] }
  0x38   :  { %398 = vmatpush.msra.mxu2 %v294_v58  ;;  %418 = vmatpush.msra.mxu3 %v326_v59  ;;  %v322_v3 = vld [vmem:[#allocation8 + $0x350] sm:$0xff]  ;;  %v316_v16 = vld [vmem:[#allocation8 + $0x320] sm:$0xff]  ;;  %v263_v42 = vld [vmem:[#allocation8 + $0x178] sm:$0xff] }
  0x39   :  { %382 = vmatpush.msra.mxu1 %v254_v60  ;;  %363 = vmatpush.msra.mxu0 %v220_v61  ;;  %v250_v4 = vld [vmem:[#allocation8 + $0x110] sm:$0xff]  ;;  %v280_v23 = vld [vmem:[#allocation8 + $0x200] sm:$0xff]  ;;  %v303_v43 = vld [vmem:[#allocation8 + $0x2b8] sm:$0xff] }
  0x3a   :  { %399 = vmatpush.msra.mxu2 %v292_v62  ;;  %419 = vmatpush.msra.mxu3 %v324_v63  ;;  %v286_v11 = vld [vmem:[#allocation8 + $0x230] sm:$0xff]  ;;  %v312_v24 = vld [vmem:[#allocation8 + $0x300] sm:$0xff]  ;;  %v335_v44 = vld [vmem:[#allocation8 + $0x3b8] sm:$0xff] }
  0x3b   :  { %383 = vmatpush.msra.mxu1 %v252_v0  ;;  %364 = vmatpush.msra.mxu0 %v218_v1  ;;  %v318_v12 = vld [vmem:[#allocation8 + $0x330] sm:$0xff]  ;;  %v229_v45 = vld [vmem:[#allocation8 + $0x68] sm:$0xff]  ;;  %v227_v49 = vld [vmem:[#allocation8 + $0x58] sm:$0xff] }
  0x3c   :  { %400 = vmatpush.msra.mxu2 %v290_v2  ;;  %420 = vmatpush.msra.mxu3 %v322_v3  ;;  %v282_v19 = vld [vmem:[#allocation8 + $0x210] sm:$0xff]  ;;  %v261_v46 = vld [vmem:[#allocation8 + $0x168] sm:$0xff]  ;;  %v259_v50 = vld [vmem:[#allocation8 + $0x158] sm:$0xff] }
  0x3d   :  { %384 = vmatpush.msra.mxu1 %v250_v4  ;;  %365 = vmatpush.msra.mxu0 %v216_v5  ;;  %v314_v20 = vld [vmem:[#allocation8 + $0x310] sm:$0xff]  ;;  %v301_v47 = vld [vmem:[#allocation8 + $0x2a8] sm:$0xff]  ;;  %v299_v51 = vld [vmem:[#allocation8 + $0x298] sm:$0xff] }
  0x3e   :  { %401 = vmatpush.msra.mxu2 %v288_v6  ;;  %421 = vmatpush.msra.mxu3 %v320_v7  ;;  %v333_v48 = vld [vmem:[#allocation8 + $0x3a8] sm:$0xff]  ;;  %v331_v52 = vld [vmem:[#allocation8 + $0x398] sm:$0xff] }
  0x3f   :  { %385 = vmatpush.msra.mxu1 %v248_v8  ;;  %430 = vmatpush.msrb.mxu0 %v247_v9  ;;  %v225_v53 = vld [vmem:[#allocation8 + $0x48] sm:$0xff]  ;;  %v223_v57 = vld [vmem:[#allocation8 + $0x38] sm:$0xff] }
  0x40   :  { %402 = vmatpush.msra.mxu2 %v286_v11  ;;  %422 = vmatpush.msra.mxu3 %v318_v12  ;;  %v257_v54 = vld [vmem:[#allocation8 + $0x148] sm:$0xff]  ;;  %v255_v58 = vld [vmem:[#allocation8 + $0x138] sm:$0xff] }
  0x41   :  { %450 = vmatpush.msrb.mxu1 %v279_v10  ;;  %431 = vmatpush.msrb.mxu0 %v245_v13  ;;  %v297_v55 = vld [vmem:[#allocation8 + $0x288] sm:$0xff]  ;;  %v295_v59 = vld [vmem:[#allocation8 + $0x278] sm:$0xff] }
  0x42   :  { %403 = vmatpush.msra.mxu2 %v284_v15  ;;  %423 = vmatpush.msra.mxu3 %v316_v16  ;;  %v329_v56 = vld [vmem:[#allocation8 + $0x388] sm:$0xff]  ;;  %v327_v60 = vld [vmem:[#allocation8 + $0x378] sm:$0xff] }
  0x43   :  { %451 = vmatpush.msrb.mxu1 %v277_v14  ;;  %432 = vmatpush.msrb.mxu0 %v243_v17  ;;  %v221_v61 = vld [vmem:[#allocation8 + $0x28] sm:$0xff]  ;;  %v219_v1 = vld [vmem:[#allocation8 + $0x18] sm:$0xff] }
  0x44   :  { %404 = vmatpush.msra.mxu2 %v282_v19  ;;  %424 = vmatpush.msra.mxu3 %v314_v20  ;;  %v253_v62 = vld [vmem:[#allocation8 + $0x128] sm:$0xff]  ;;  %v251_v2 = vld [vmem:[#allocation8 + $0x118] sm:$0xff] }
  0x45   :  { %452 = vmatpush.msrb.mxu1 %v275_v18  ;;  %433 = vmatpush.msrb.mxu0 %v241_v21  ;;  %v293_v63 = vld [vmem:[#allocation8 + $0x268] sm:$0xff]  ;;  %v291_v3 = vld [vmem:[#allocation8 + $0x258] sm:$0xff] }
  0x46   :  { %405 = vmatpush.msra.mxu2 %v280_v23  ;;  %425 = vmatpush.msra.mxu3 %v312_v24  ;;  %v325_v0 = vld [vmem:[#allocation8 + $0x368] sm:$0xff]  ;;  %v323_v4 = vld [vmem:[#allocation8 + $0x358] sm:$0xff] }
  0x47   :  { %453 = vmatpush.msrb.mxu1 %v273_v22  ;;  %434 = vmatpush.msrb.mxu0 %v239_v25  ;;  %v217_v5 = vld [vmem:[#allocation8 + $0x8] sm:$0xff]  ;;  %v287_v9 = vld [vmem:[#allocation8 + $0x238] sm:$0xff] }
  0x48   :  { %470 = vmatpush.msrb.mxu2 %v311_v27  ;;  %490 = vmatpush.msrb.mxu3 %v343_v28  ;;  %v249_v6 = vld [vmem:[#allocation8 + $0x108] sm:$0xff]  ;;  %v319_v10 = vld [vmem:[#allocation8 + $0x338] sm:$0xff] }
  0x49   :  { %454 = vmatpush.msrb.mxu1 %v271_v26  ;;  %435 = vmatpush.msrb.mxu0 %v237_v29  ;;  %v289_v7 = vld [vmem:[#allocation8 + $0x248] sm:$0xff]  ;;  %v283_v13 = vld [vmem:[#allocation8 + $0x218] sm:$0xff] }
  0x4a   :  { %471 = vmatpush.msrb.mxu2 %v309_v31  ;;  %491 = vmatpush.msrb.mxu3 %v341_v32  ;;  %v321_v8 = vld [vmem:[#allocation8 + $0x348] sm:$0xff]  ;;  %v315_v14 = vld [vmem:[#allocation8 + $0x318] sm:$0xff] }
  0x4b   :  { %455 = vmatpush.msrb.mxu1 %v269_v30  ;;  %436 = vmatpush.msrb.mxu0 %v235_v33  ;;  %v285_v11 = vld [vmem:[#allocation8 + $0x228] sm:$0xff]  ;;  %v118_v17 = vld [vmem:[#allocation7] sm:$0xf]  ;;  %v526_v30 = vld [vmem:[#allocation10 + $0x70] sm:$0xff] }
  0x4c   :  { %472 = vmatpush.msrb.mxu2 %v307_v35  ;;  %492 = vmatpush.msrb.mxu3 %v339_v36  ;;  %v317_v12 = vld [vmem:[#allocation8 + $0x328] sm:$0xff]  ;;  %v120_v18 = vperm.slane %v118_v17, 0  ;;  %v121_v19 = vperm.slane %v118_v17, 1  ;;  %v527_v26 = vld [vmem:[#allocation10 + $0x78] sm:$0xff]  ;;  %v122_v28 = vperm.slane %v118_v17, 2  ;;  %v123_v29 = vperm.slane %v118_v17, 3 }
  0x4d   :  { %456 = vmatpush.msrb.mxu1 %v267_v34  ;;  %437 = vmatpush.msrb.mxu0 %v233_v37  ;;  %v281_v15 = vld [vmem:[#allocation8 + $0x208] sm:$0xff]  ;;  %v543_v27 = vld [vmem:[#allocation10 + $0xf8] sm:$0xff]  ;;  %v524_v36 = vld [vmem:[#allocation10 + $0x60] sm:$0xff] }
  0x4e   :  { %473 = vmatpush.msrb.mxu2 %v305_v39  ;;  %493 = vmatpush.msrb.mxu3 %v337_v40  ;;  %v313_v16 = vld [vmem:[#allocation8 + $0x308] sm:$0xff]  ;;  %v523_v39 = vld [vmem:[#allocation10 + $0x58] sm:$0xff]  ;;  %v522_v40 = vld [vmem:[#allocation10 + $0x50] sm:$0xff] }
  0x4f   :  { %457 = vmatpush.msrb.mxu1 %v265_v38  ;;  %438 = vmatpush.msrb.mxu0 %v231_v41  ;;  %v525_v31 = vld [vmem:[#allocation10 + $0x68] sm:$0xff]  ;;  %v542_v41 = vld [vmem:[#allocation10 + $0xf0] sm:$0xff] }
  0x50   :  { %474 = vmatpush.msrb.mxu2 %v303_v43  ;;  %494 = vmatpush.msrb.mxu3 %v335_v44  ;;  %v541_v43 = vld [vmem:[#allocation10 + $0xe8] sm:$0xff]  ;;  %v520_v44 = vld [vmem:[#allocation10 + $0x40] sm:$0xff] }
  0x51   :  { %458 = vmatpush.msrb.mxu1 %v263_v42  ;;  %439 = vmatpush.msrb.mxu0 %v229_v45  ;;  %v521_v42 = vld [vmem:[#allocation10 + $0x48] sm:$0xff]  ;;  %v540_v45 = vld [vmem:[#allocation10 + $0xe0] sm:$0xff] }
  0x52   :  { %475 = vmatpush.msrb.mxu2 %v301_v47  ;;  %495 = vmatpush.msrb.mxu3 %v333_v48  ;;  %v539_v47 = vld [vmem:[#allocation10 + $0xd8] sm:$0xff]  ;;  %v518_v48 = vld [vmem:[#allocation10 + $0x30] sm:$0xff] }
  0x53   :  { %459 = vmatpush.msrb.mxu1 %v261_v46  ;;  %440 = vmatpush.msrb.mxu0 %v227_v49  ;;  %v519_v46 = vld [vmem:[#allocation10 + $0x38] sm:$0xff]  ;;  %v538_v49 = vld [vmem:[#allocation10 + $0xd0] sm:$0xff] }
  0x54   :  { %476 = vmatpush.msrb.mxu2 %v299_v51  ;;  %496 = vmatpush.msrb.mxu3 %v331_v52  ;;  %v537_v51 = vld [vmem:[#allocation10 + $0xc8] sm:$0xff]  ;;  %v516_v52 = vld [vmem:[#allocation10 + $0x20] sm:$0xff] }
  0x55   :  { %460 = vmatpush.msrb.mxu1 %v259_v50  ;;  %441 = vmatpush.msrb.mxu0 %v225_v53  ;;  %v517_v50 = vld [vmem:[#allocation10 + $0x28] sm:$0xff]  ;;  %v536_v53 = vld [vmem:[#allocation10 + $0xc0] sm:$0xff] }
  0x56   :  { %477 = vmatpush.msrb.mxu2 %v297_v55  ;;  %497 = vmatpush.msrb.mxu3 %v329_v56  ;;  %v535_v55 = vld [vmem:[#allocation10 + $0xb8] sm:$0xff]  ;;  %v514_v56 = vld [vmem:[#allocation10 + $0x10] sm:$0xff] }
  0x57   :  { %461 = vmatpush.msrb.mxu1 %v257_v54  ;;  %442 = vmatpush.msrb.mxu0 %v223_v57  ;;  %v515_v54 = vld [vmem:[#allocation10 + $0x18] sm:$0xff]  ;;  %v534_v57 = vld [vmem:[#allocation10 + $0xb0] sm:$0xff] }
  0x58   :  { %478 = vmatpush.msrb.mxu2 %v295_v59  ;;  %498 = vmatpush.msrb.mxu3 %v327_v60  ;;  %v533_v59 = vld [vmem:[#allocation10 + $0xa8] sm:$0xff]  ;;  %v512_v60 = vld [vmem:[#allocation10] sm:$0xff] }
  0x59   :  { %462 = vmatpush.msrb.mxu1 %v255_v58  ;;  %443 = vmatpush.msrb.mxu0 %v221_v61  ;;  %v513_v58 = vld [vmem:[#allocation10 + $0x8] sm:$0xff]  ;;  %v532_v61 = vld [vmem:[#allocation10 + $0xa0] sm:$0xff] }
  0x5a   :  { %479 = vmatpush.msrb.mxu2 %v293_v63  ;;  %499 = vmatpush.msrb.mxu3 %v325_v0  ;;  %v530_v63 = vld [vmem:[#allocation10 + $0x90] sm:$0xff]  ;;  %v529_v0 = vld [vmem:[#allocation10 + $0x88] sm:$0xff] }
  0x5b   :  { %463 = vmatpush.msrb.mxu1 %v253_v62  ;;  %444 = vmatpush.msrb.mxu0 %v219_v1  ;;  %v531_v62 = vld [vmem:[#allocation10 + $0x98] sm:$0xff]  ;;  %v528_v1 = vld [vmem:[#allocation10 + $0x80] sm:$0xff] }
  0x5c   :  { %480 = vmatpush.msrb.mxu2 %v291_v3  ;;  %500 = vmatpush.msrb.mxu3 %v323_v4 }
  0x5d   :  { %464 = vmatpush.msrb.mxu1 %v251_v2  ;;  %445 = vmatpush.msrb.mxu0 %v217_v5  ;;  %v344_v2 = vld [vmem:[%s885_s4] sm:$0x3] }
  0x5e   :  { %481 = vmatpush.msrb.mxu2 %v289_v7  ;;  %501 = vmatpush.msrb.mxu3 %v321_v8  ;;  %v346_v4 = vperm.slane %v344_v2, 0  ;;  %v347_v8 = vperm.slane %v344_v2, 1 }
  0x5f   :  { %465 = vmatpush.msrb.mxu1 %v249_v6 }
  0x60   :  { %482 = vmatpush.msrb.mxu2 %v287_v9  ;;  %502 = vmatpush.msrb.mxu3 %v319_v10 }
  0x62   :  { %483 = vmatpush.msrb.mxu2 %v285_v11  ;;  %503 = vmatpush.msrb.mxu3 %v317_v12 }
  0x64   :  { %484 = vmatpush.msrb.mxu2 %v283_v13  ;;  %504 = vmatpush.msrb.mxu3 %v315_v14 }
  0x66   :  { %485 = vmatpush.msrb.mxu2 %v281_v15  ;;  %505 = vmatpush.msrb.mxu3 %v313_v16 }
  0xa2   :  { %v149_v20 = vpop.f32.mrf.mxu2  ;;  %v169_v21 = vpop.f32.mrf.mxu3 }
  0xa3   :  { %v150_v22 = vadd.f32 %v149_v20, %v120_v18  ;;  %v170_v23 = vadd.f32 %v169_v21, %v121_v19 }
  0xa5   :  { %v212_v24 = vmax.f32 %v150_v22, 0.0  ;;  %v213_v25 = vmax.f32 %v170_v23, 0.0  ;;  %v644_v23 = vld [vmem:[%s887_s6] ss:$0 sm:$0xff] }
  0xa7   :  { %366 = vmatmul.f32.vlgmr.msra.gmra.mxu0 %v212_v24  ;;  %386 = vmatmul.f32.vlgmr.msra.gmra.mxu1 %v213_v25 }
  0xa8   :  { %548 = vmatpush.msra.mxu0 %v527_v26  ;;  %568 = vmatpush.msra.mxu1 %v543_v27 }
  0xaa   :  { %v189_v32 = vpop.f32.mrf.mxu2  ;;  %v209_v33 = vpop.f32.mrf.mxu3  ;;  %549 = vmatpush.msra.mxu0 %v526_v30  ;;  %569 = vmatpush.msra.mxu1 %v542_v41 }
  0xab   :  { %v190_v34 = vadd.f32 %v189_v32, %v122_v28  ;;  %v210_v35 = vadd.f32 %v209_v33, %v123_v29 }
  0xac   :  { %550 = vmatpush.msra.mxu0 %v525_v31  ;;  %570 = vmatpush.msra.mxu1 %v541_v43 }
  0xad   :  { %v214_v37 = vmax.f32 %v190_v34, 0.0  ;;  %v215_v38 = vmax.f32 %v210_v35, 0.0 }
  0xae   :  { %551 = vmatpush.msra.mxu0 %v524_v36  ;;  %571 = vmatpush.msra.mxu1 %v540_v45 }
  0xaf   :  { %406 = vmatmul.f32.vlgmr.msra.gmra.mxu2 %v214_v37  ;;  %426 = vmatmul.f32.vlgmr.msra.gmra.mxu3 %v215_v38 }
  0xb0   :  { %446 = vmatmul.f32.vlgmr.msrb.gmra.mxu0 %v212_v24  ;;  %466 = vmatmul.f32.vlgmr.msrb.gmra.mxu1 %v213_v25 }
  0xb1   :  { %552 = vmatpush.msra.mxu0 %v523_v39  ;;  %572 = vmatpush.msra.mxu1 %v539_v47 }
  0xb3   :  { %553 = vmatpush.msra.mxu0 %v522_v40  ;;  %573 = vmatpush.msra.mxu1 %v538_v49 }
  0xb5   :  { %554 = vmatpush.msra.mxu0 %v521_v42  ;;  %574 = vmatpush.msra.mxu1 %v537_v51 }
  0xb7   :  { %486 = vmatmul.f32.vlgmr.msrb.gmra.mxu2 %v214_v37  ;;  %506 = vmatmul.f32.vlgmr.msrb.gmra.mxu3 %v215_v38 }
  0xb8   :  { %555 = vmatpush.msra.mxu0 %v520_v44  ;;  %575 = vmatpush.msra.mxu1 %v536_v53 }
  0xba   :  { %556 = vmatpush.msra.mxu0 %v519_v46  ;;  %576 = vmatpush.msra.mxu1 %v535_v55 }
  0xbc   :  { %557 = vmatpush.msra.mxu0 %v518_v48  ;;  %577 = vmatpush.msra.mxu1 %v534_v57 }
  0xbe   :  { %558 = vmatpush.msra.mxu0 %v517_v50  ;;  %578 = vmatpush.msra.mxu1 %v533_v59 }
  0xc0   :  { %559 = vmatpush.msra.mxu0 %v516_v52  ;;  %579 = vmatpush.msra.mxu1 %v532_v61 }
  0xc2   :  { %560 = vmatpush.msra.mxu0 %v515_v54  ;;  %580 = vmatpush.msra.mxu1 %v531_v62 }
  0xc4   :  { %561 = vmatpush.msra.mxu0 %v514_v56  ;;  %581 = vmatpush.msra.mxu1 %v530_v63 }
  0xc6   :  { %562 = vmatpush.msra.mxu0 %v513_v58  ;;  %582 = vmatpush.msra.mxu1 %v529_v0 }
  0xc8   :  { %563 = vmatpush.msra.mxu0 %v512_v60  ;;  %583 = vmatpush.msra.mxu1 %v528_v1 }
 0x124   :  { %v367_v3 = vpop.f32.mrf.mxu0  ;;  %v387_v6 = vpop.f32.mrf.mxu1 }
 0x125   :  { %v368_v5 = vadd.f32 %v367_v3, %v346_v4 }
 0x127   :  { %v388_v7 = vadd.f32 %v387_v6, %v368_v5 }
 0x12d   :  { %v447_v9 = vpop.f32.mrf.mxu0  ;;  %v467_v16 = vpop.f32.mrf.mxu1 }
 0x12e   :  { %v448_v13 = vadd.f32 %v447_v9, %v347_v8 }
 0x130   :  { %v468_v17 = vadd.f32 %v467_v16, %v448_v13 }
 0x132   :  { %v407_v10 = vpop.f32.mrf.mxu2  ;;  %v427_v11 = vpop.f32.mrf.mxu3 }
 0x133   :  { %v408_v12 = vadd.f32 %v407_v10, %v388_v7 }
 0x135   :  { %v428_v14 = vadd.f32 %v427_v11, %v408_v12 }
 0x137   :  { %v510_v15 = vmax.f32 %v428_v14, 0.0 }
 0x139   :  { %564 = vmatmul.f32.vlgmr.msra.gmra.mxu0 %v510_v15 }
 0x13a   :  { %v487_v18 = vpop.f32.mrf.mxu2  ;;  %v507_v20 = vpop.f32.mrf.mxu3 }
 0x13b   :  { %v488_v19 = vadd.f32 %v487_v18, %v468_v17 }
 0x13d   :  { %v508_v21 = vadd.f32 %v507_v20, %v488_v19 }
 0x13f   :  { %v511_v22 = vmax.f32 %v508_v21, 0.0 }
 0x141   :  { %584 = vmatmul.f32.vlgmr.msra.gmra.mxu1 %v511_v22 }
 0x1b6   :  { %v565_v24 = vpop.f32.mrf.mxu0 }
 0x1b7   :  { %v566_v25 = vadd.f32 %v644_v23, %v565_v24 }
 0x1be   :  { %v585_v26 = vpop.f32.mrf.mxu1 }
 0x1bf   :  { %v586_v27 = vadd.f32 %v585_v26, %v566_v25 }
 0x1c1   :  { %v631_v28 = vmul.f32 -1.442695, %v586_v27 }
 0x1c3   :  { %645 = vpow2.f32 %v631_v28 }
 0x1c9   :  { %v646_v29 = vpop.eup %645 }
 0x1ca   :  { %v591_v30 = vadd.f32 1.0, %v646_v29 }
 0x1cc   :  { %647 = vrcp.f32 %v591_v30  ;;  %v603_v34 = vand.u32 2147483648, %v591_v30  ;;  %v601_v36 = vand.u32 2147483647, %v591_v30  ;;  %vm597_vm2 = vweird.f32 %v591_v30 }
 0x1ce   :  { %v604_v38 = vor.u32 1.1754944e-38, %v603_v34  ;;  %vm602_vm4 = vcmp.eq.f32.partialorder %v601_v36, 8.507059e+37 }
 0x1d2   :  { %v648_v31 = vpop.eup %647 }
 0x1d3   :  { %v593_v32 = vmul.f32 %v648_v31, %v591_v30  ;;  %vm598_vm1 = vweird.f32 %v648_v31 }
 0x1d4   :  { %vm599_vm3 = vmor %vm597_vm2, %vm598_vm1 }
 0x1d5   :  { %v594_v33 = vsub.f32 1.0, %v593_v32 }
 0x1d7   :  { %v595_v35 = vmul.f32 %v648_v31, %v594_v33 }
 0x1d9   :  { %v596_v37 = vadd.f32 %v648_v31, %v595_v35 }
 0x1db   :  { %v600_v39 = vsel %vm599_vm3, %v648_v31, %v596_v37 }
 0x1dc   :  { %v605_v40 = vsel %vm602_vm4, %v604_v38, %v600_v39 }
 0x1dd   :  { %607 = vst [vmem:[#allocation11] sm:$0xff] %v605_v40 }
 0x1de   :  { %618 = dma.vmem_to_hbm [thread:$0]  %s614_s8, 128, %s616_s10, [#allocation4]  }
 0x1df   :  { %799 = dma.done.wait [#allocation4], 128  }
 0x1e0   :  { %800 = vsyncadd [#allocation4], 4294967168 }
 0x1e1   :  { %623 = vsyncpa [#allocation3], 1 }
 0x1e2   :  { %624 = vsyncpa [#allocation6], 1 }
 0x1e3   :  { %625 = vsyncpa [#allocation9], 1 }
 0x1e4   :  { %626 = vsyncpa [#allocation4], 1 }

// kernel: tpu_custom_call.1
= control target key start
LH: loop header
LB: loop body
LE: loop exit
PB: predicated region body
PF: predicated region fallthrough
CT: control target
= control target key end

     0   :  { %12 = vsyncpa [#allocation3], 0  ;;  %s881_s0 = inlined_call_operand.hbm [shape: f32[8,32], index: 0, kind: input, shape index: {}]   ;;  %s882_s1 = inlined_call_operand.hbm [shape: f32[32,512], index: 1, kind: input, shape index: {}]   ;;  %s883_s2 = inlined_call_operand.hbm [shape: f32[1,512], index: 2, kind: input, shape index: {}]   ;;  %s884_s3 = inlined_call_operand.hbm [shape: f32[512,256], index: 3, kind: input, shape index: {}]   ;;  %s885_s4 = inlined_call_operand.vmem [shape: f32[1,256], index: 4, kind: input, shape index: {}]   ;;  %s886_s5 = inlined_call_operand.hbm [shape: f32[256,128], index: 5, kind: input, shape index: {}]   ;;  %s887_s6 = inlined_call_operand.vmem [shape: f32[1,128], index: 6, kind: input, shape index: {}]   ;;  %s888_s7 = inlined_call_operand.hbm [shape: f32[8,128], index: 7, kind: output, shape index: {}]  }
   0x1   :  { %13 = vsyncpa [#allocation6], 0 }
   0x2   :  { %14 = vsyncpa [#allocation9], 0  ;;  %s31_s26 = sshll.u32 %s882_s1, 4  ;;  %s32_s26 = int_to_ptr.hbm [resolvable:$true] %s31_s26 }
   0x3   :  { %15 = vsyncpa [#allocation4], 0  ;;  %s801_s27 = smov [#allocation5]   ;;  %s55_s8 = sshll.u32 %s884_s3, 4  ;;  %s56_s8 = int_to_ptr.hbm [resolvable:$true] %s55_s8 }
   0x4   :  { %s33_s28 = sshll.u32 %s801_s27, 4  ;;  %s802_s9 = smov 512   ;;  %s34_s28 = int_to_ptr.vmem [resolvable:$true] %s33_s28 }
   0x5   :  { %s803_s10 = smov 32   ;;  %s804_s11 = smov [#allocation8]  }
   0x6   :  { %39 = dma.hbm_to_vmem [thread:$0]  %s32_s26, 2048, %s34_s28, [#allocation6], %s802_s9, %s802_s9, %s803_s10  }
   0x7   :  { %s57_s12 = sshll.u32 %s804_s11, 4  ;;  %s805_s13 = smov 256   ;;  %s58_s12 = int_to_ptr.vmem [resolvable:$true] %s57_s12 }
   0x8   :  { %s806_s14 = smov 16   ;;  %s21_s16 = sshll.u32 %s881_s0, 4  ;;  %s22_s16 = int_to_ptr.hbm [resolvable:$true] %s21_s16 }
   0x9   :  { %63 = dma.hbm_to_vmem [thread:$0]  %s56_s8, 16384, %s58_s12, [#allocation9], %s805_s13, %s805_s13, %s806_s14  }
   0xa   :  { %s807_s17 = smov [#allocation2]   ;;  %s45_s20 = sshll.u32 %s883_s2, 4  ;;  %s46_s20 = int_to_ptr.hbm [resolvable:$true] %s45_s20 }
   0xb   :  { %s23_s18 = sshll.u32 %s807_s17, 4  ;;  %s808_s21 = smov [#allocation7]   ;;  %s24_s18 = int_to_ptr.vmem [resolvable:$true] %s23_s18 }
   0xc   :  { %26 = dma.hbm_to_vmem [thread:$0]  %s22_s16, 128, %s24_s18, [#allocation3]  }
   0xd   :  { %s47_s22 = sshll.u32 %s808_s21, 4  ;;  %s70_s25 = sshll.u32 %s886_s5, 4  ;;  %s48_s22 = int_to_ptr.vmem [resolvable:$true] %s47_s22  ;;  %s71_s25 = int_to_ptr.hbm [resolvable:$true] %s70_s25 }
   0xe   :  { %50 = dma.hbm_to_vmem [thread:$0]  %s46_s20, 64, %s48_s22, [#allocation6]  }
   0xf   :  { %s809_s0 = smov [#allocation10]   ;;  %s810_s27 = smov 128  }
  0x10   :  { %s72_s26 = sshll.u32 %s809_s0, 4  ;;  %s811_s28 = smov 8   ;;  %s73_s26 = int_to_ptr.vmem [resolvable:$true] %s72_s26 }
  0x11   :  { %78 = dma.hbm_to_vmem [thread:$0]  %s71_s25, 4096, %s73_s26, [#allocation9], %s810_s27, %s810_s27, %s811_s28  }
  0x12   :  { %793 = dma.done.wait [#allocation3], 128  }
  0x13   :  { %794 = vsyncadd [#allocation3], 4294967168 }
  0x14   :  { %795 = dma.done.wait [#allocation6], 2112  }
  0x15   :  { %796 = vsyncadd [#allocation6], 4294965184 }
  0x16   :  { %797 = dma.done.wait [#allocation9], 20480  }
  0x17   :  { %798 = vsyncadd [#allocation9], 4294946816  ;;  %v114_v0 = vld [vmem:[#allocation5 + $0x60] sm:$0xff]  ;;  %v115_v1 = vld [vmem:[#allocation5 + $0x68] sm:$0xff]  ;;  %vm128_vm0 = vcmask 261120   ;;  %s812_s30 = smov [#allocation11]  }
  0x18   :  { %v110_v2 = vld [vmem:[#allocation5 + $0x40] sm:$0xff]  ;;  %144 = vmatpush.msra.mxu2 %v114_v0  ;;  %164 = vmatpush.msra.mxu3 %v115_v1  ;;  %v111_v3 = vld [vmem:[#allocation5 + $0x48] sm:$0xff]  ;;  %v101_v8 = vld [vmem:[#allocation2] sm:$0xff]  ;;  %s613_s8 = sshll.u32 %s812_s30, 4  ;;  %s615_s10 = sshll.u32 %s888_s7, 4  ;;  %s614_s8 = int_to_ptr.vmem [resolvable:$true] %s613_s8  ;;  %s616_s10 = int_to_ptr.hbm [resolvable:$true] %s615_s10 }
  0x19   :  { %v106_v4 = vld [vmem:[#allocation5 + $0x20] sm:$0xff]  ;;  %v107_v5 = vld [vmem:[#allocation5 + $0x28] sm:$0xff]  ;;  %v246_v9 = vld [vmem:[#allocation8 + $0xf0] sm:$0xff] }
  0x1a   :  { %145 = vmatpush.msra.mxu2 %v110_v2  ;;  %165 = vmatpush.msra.mxu3 %v111_v3  ;;  %v102_v6 = vld [vmem:[#allocation5] sm:$0xff]  ;;  %v103_v7 = vld [vmem:[#allocation5 + $0x8] sm:$0xff]  ;;  %v116_v10 = vld [vmem:[#allocation5 + $0x70] sm:$0xff] }
  0x1b   :  { %v117_v11 = vld [vmem:[#allocation5 + $0x78] sm:$0xff]  ;;  %350 = vmatpush.msra.mxu0 %v246_v9  ;;  %v244_v13 = vld [vmem:[#allocation8 + $0xe0] sm:$0xff]  ;;  %v112_v14 = vld [vmem:[#allocation5 + $0x50] sm:$0xff] }
  0x1c   :  { %146 = vmatpush.msra.mxu2 %v106_v4  ;;  %166 = vmatpush.msra.mxu3 %v107_v5  ;;  %v278_v12 = vld [vmem:[#allocation8 + $0x1f0] sm:$0xff]  ;;  %v276_v16 = vld [vmem:[#allocation8 + $0x1e0] sm:$0xff]  ;;  %v247_v9 = vld [vmem:[#allocation8 + $0xf8] sm:$0xff] }
  0x1d   :  { %v113_v15 = vld [vmem:[#allocation5 + $0x58] sm:$0xff]  ;;  %v108_v18 = vld [vmem:[#allocation5 + $0x30] sm:$0xff]  ;;  %370 = vmatpush.msra.mxu1 %v278_v12  ;;  %351 = vmatpush.msra.mxu0 %v244_v13  ;;  %v240_v21 = vld [vmem:[#allocation8 + $0xc0] sm:$0xff] }
  0x1e   :  { %147 = vmatpush.msra.mxu2 %v102_v6  ;;  %167 = vmatpush.msra.mxu3 %v103_v7  ;;  %v242_v17 = vld [vmem:[#allocation8 + $0xd0] sm:$0xff]  ;;  %v272_v24 = vld [vmem:[#allocation8 + $0x1c0] sm:$0xff]  ;;  %v245_v13 = vld [vmem:[#allocation8 + $0xe8] sm:$0xff] }
  0x1f   :  { %627 = vmatmul.msk.f32.vlgmr.msra.gmra.mxu2 %vm128_vm0, %v101_v8  ;;  %628 = vmatmul.msk.f32.vlgmr.msra.gmra.mxu3 %vm128_vm0, %v101_v8  ;;  %v109_v19 = vld [vmem:[#allocation5 + $0x38] sm:$0xff]  ;;  %v104_v22 = vld [vmem:[#allocation5 + $0x10] sm:$0xff]  ;;  %v236_v29 = vld [vmem:[#allocation8 + $0xa0] sm:$0xff] }
  0x20   :  { %184 = vmatpush.msrb.mxu2 %v116_v10  ;;  %204 = vmatpush.msrb.mxu3 %v117_v11  ;;  %v274_v20 = vld [vmem:[#allocation8 + $0x1d0] sm:$0xff]  ;;  %v308_v30 = vld [vmem:[#allocation8 + $0x2e0] sm:$0xff]  ;;  %v279_v10 = vld [vmem:[#allocation8 + $0x1f8] sm:$0xff] }
  0x21   :  { %v105_v23 = vld [vmem:[#allocation5 + $0x18] sm:$0xff]  ;;  %371 = vmatpush.msra.mxu1 %v276_v16  ;;  %352 = vmatpush.msra.mxu0 %v242_v17  ;;  %v340_v31 = vld [vmem:[#allocation8 + $0x3e0] sm:$0xff] }
  0x22   :  { %185 = vmatpush.msrb.mxu2 %v112_v14  ;;  %205 = vmatpush.msrb.mxu3 %v113_v15  ;;  %v238_v25 = vld [vmem:[#allocation8 + $0xb0] sm:$0xff]  ;;  %v268_v32 = vld [vmem:[#allocation8 + $0x1a0] sm:$0xff]  ;;  %v277_v14 = vld [vmem:[#allocation8 + $0x1e8] sm:$0xff] }
  0x23   :  { %372 = vmatpush.msra.mxu1 %v274_v20  ;;  %353 = vmatpush.msra.mxu0 %v240_v21  ;;  %v310_v26 = vld [vmem:[#allocation8 + $0x2f0] sm:$0xff]  ;;  %v232_v37 = vld [vmem:[#allocation8 + $0x80] sm:$0xff]  ;;  %v243_v17 = vld [vmem:[#allocation8 + $0xd8] sm:$0xff] }
  0x24   :  { %186 = vmatpush.msrb.mxu2 %v108_v18  ;;  %206 = vmatpush.msrb.mxu3 %v109_v19  ;;  %v342_v27 = vld [vmem:[#allocation8 + $0x3f0] sm:$0xff]  ;;  %v304_v38 = vld [vmem:[#allocation8 + $0x2c0] sm:$0xff]  ;;  %v275_v18 = vld [vmem:[#allocation8 + $0x1d8] sm:$0xff] }
  0x25   :  { %v270_v28 = vld [vmem:[#allocation8 + $0x1b0] sm:$0xff]  ;;  %373 = vmatpush.msra.mxu1 %v272_v24  ;;  %354 = vmatpush.msra.mxu0 %v238_v25  ;;  %v336_v39 = vld [vmem:[#allocation8 + $0x3c0] sm:$0xff]  ;;  %v241_v21 = vld [vmem:[#allocation8 + $0xc8] sm:$0xff] }
  0x26   :  { %187 = vmatpush.msrb.mxu2 %v104_v22  ;;  %207 = vmatpush.msrb.mxu3 %v105_v23  ;;  %v234_v33 = vld [vmem:[#allocation8 + $0x90] sm:$0xff]  ;;  %v264_v40 = vld [vmem:[#allocation8 + $0x180] sm:$0xff]  ;;  %v273_v22 = vld [vmem:[#allocation8 + $0x1c8] sm:$0xff] }
  0x27   :  { %629 = vmatmul.msk.f32.vlgmr.msrb.gmra.mxu2 %vm128_vm0, %v101_v8  ;;  %630 = vmatmul.msk.f32.vlgmr.msrb.gmra.mxu3 %vm128_vm0, %v101_v8  ;;  %v306_v34 = vld [vmem:[#allocation8 + $0x2d0] sm:$0xff]  ;;  %v228_v45 = vld [vmem:[#allocation8 + $0x60] sm:$0xff]  ;;  %v239_v25 = vld [vmem:[#allocation8 + $0xb8] sm:$0xff] }
  0x28   :  { %390 = vmatpush.msra.mxu2 %v310_v26  ;;  %410 = vmatpush.msra.mxu3 %v342_v27  ;;  %v338_v35 = vld [vmem:[#allocation8 + $0x3d0] sm:$0xff]  ;;  %v300_v46 = vld [vmem:[#allocation8 + $0x2a0] sm:$0xff]  ;;  %v271_v26 = vld [vmem:[#allocation8 + $0x1b8] sm:$0xff] }
  0x29   :  { %374 = vmatpush.msra.mxu1 %v270_v28  ;;  %355 = vmatpush.msra.mxu0 %v236_v29  ;;  %v266_v36 = vld [vmem:[#allocation8 + $0x190] sm:$0xff]  ;;  %v332_v47 = vld [vmem:[#allocation8 + $0x3a0] sm:$0xff]  ;;  %v311_v27 = vld [vmem:[#allocation8 + $0x2f8] sm:$0xff] }
  0x2a   :  { %391 = vmatpush.msra.mxu2 %v308_v30  ;;  %411 = vmatpush.msra.mxu3 %v340_v31  ;;  %v230_v41 = vld [vmem:[#allocation8 + $0x70] sm:$0xff]  ;;  %v260_v48 = vld [vmem:[#allocation8 + $0x160] sm:$0xff]  ;;  %v343_v28 = vld [vmem:[#allocation8 + $0x3f8] sm:$0xff] }
  0x2b   :  { %375 = vmatpush.msra.mxu1 %v268_v32  ;;  %356 = vmatpush.msra.mxu0 %v234_v33  ;;  %v302_v42 = vld [vmem:[#allocation8 + $0x2b0] sm:$0xff]  ;;  %v224_v53 = vld [vmem:[#allocation8 + $0x40] sm:$0xff]  ;;  %v237_v29 = vld [vmem:[#allocation8 + $0xa8] sm:$0xff] }
  0x2c   :  { %392 = vmatpush.msra.mxu2 %v306_v34  ;;  %412 = vmatpush.msra.mxu3 %v338_v35  ;;  %v334_v43 = vld [vmem:[#allocation8 + $0x3b0] sm:$0xff]  ;;  %v296_v54 = vld [vmem:[#allocation8 + $0x280] sm:$0xff]  ;;  %v269_v30 = vld [vmem:[#allocation8 + $0x1a8] sm:$0xff] }
  0x2d   :  { %376 = vmatpush.msra.mxu1 %v266_v36  ;;  %357 = vmatpush.msra.mxu0 %v232_v37  ;;  %v262_v44 = vld [vmem:[#allocation8 + $0x170] sm:$0xff]  ;;  %v328_v55 = vld [vmem:[#allocation8 + $0x380] sm:$0xff]  ;;  %v309_v31 = vld [vmem:[#allocation8 + $0x2e8] sm:$0xff] }
  0x2e   :  { %393 = vmatpush.msra.mxu2 %v304_v38  ;;  %413 = vmatpush.msra.mxu3 %v336_v39  ;;  %v226_v49 = vld [vmem:[#allocation8 + $0x50] sm:$0xff]  ;;  %v256_v56 = vld [vmem:[#allocation8 + $0x140] sm:$0xff]  ;;  %v341_v32 = vld [vmem:[#allocation8 + $0x3e8] sm:$0xff] }
  0x2f   :  { %377 = vmatpush.msra.mxu1 %v264_v40  ;;  %358 = vmatpush.msra.mxu0 %v230_v41  ;;  %v298_v50 = vld [vmem:[#allocation8 + $0x290] sm:$0xff]  ;;  %v220_v61 = vld [vmem:[#allocation8 + $0x20] sm:$0xff]  ;;  %v235_v33 = vld [vmem:[#allocation8 + $0x98] sm:$0xff] }
  0x30   :  { %394 = vmatpush.msra.mxu2 %v302_v42  ;;  %414 = vmatpush.msra.mxu3 %v334_v43  ;;  %v330_v51 = vld [vmem:[#allocation8 + $0x390] sm:$0xff]  ;;  %v292_v62 = vld [vmem:[#allocation8 + $0x260] sm:$0xff]  ;;  %v267_v34 = vld [vmem:[#allocation8 + $0x198] sm:$0xff] }
  0x31   :  { %378 = vmatpush.msra.mxu1 %v262_v44  ;;  %359 = vmatpush.msra.mxu0 %v228_v45  ;;  %v258_v52 = vld [vmem:[#allocation8 + $0x150] sm:$0xff]  ;;  %v324_v63 = vld [vmem:[#allocation8 + $0x360] sm:$0xff]  ;;  %v307_v35 = vld [vmem:[#allocation8 + $0x2d8] sm:$0xff] }
  0x32   :  { %395 = vmatpush.msra.mxu2 %v300_v46  ;;  %415 = vmatpush.msra.mxu3 %v332_v47  ;;  %v222_v57 = vld [vmem:[#allocation8 + $0x30] sm:$0xff]  ;;  %v252_v0 = vld [vmem:[#allocation8 + $0x120] sm:$0xff]  ;;  %v339_v36 = vld [vmem:[#allocation8 + $0x3d8] sm:$0xff] }
  0x33   :  { %379 = vmatpush.msra.mxu1 %v260_v48  ;;  %360 = vmatpush.msra.mxu0 %v226_v49  ;;  %v294_v58 = vld [vmem:[#allocation8 + $0x270] sm:$0xff]  ;;  %v216_v5 = vld [vmem:[#allocation8] sm:$0xff]  ;;  %v233_v37 = vld [vmem:[#allocation8 + $0x88] sm:$0xff] }
  0x34   :  { %396 = vmatpush.msra.mxu2 %v298_v50  ;;  %416 = vmatpush.msra.mxu3 %v330_v51  ;;  %v326_v59 = vld [vmem:[#allocation8 + $0x370] sm:$0xff]  ;;  %v288_v6 = vld [vmem:[#allocation8 + $0x240] sm:$0xff]  ;;  %v265_v38 = vld [vmem:[#allocation8 + $0x188] sm:$0xff] }
  0x35   :  { %380 = vmatpush.msra.mxu1 %v258_v52  ;;  %361 = vmatpush.msra.mxu0 %v224_v53  ;;  %v254_v60 = vld [vmem:[#allocation8 + $0x130] sm:$0xff]  ;;  %v320_v7 = vld [vmem:[#allocation8 + $0x340] sm:$0xff]  ;;  %v305_v39 = vld [vmem:[#allocation8 + $0x2c8] sm:$0xff] }
  0x36   :  { %397 = vmatpush.msra.mxu2 %v296_v54  ;;  %417 = vmatpush.msra.mxu3 %v328_v55  ;;  %v218_v1 = vld [vmem:[#allocation8 + $0x10] sm:$0xff]  ;;  %v248_v8 = vld [vmem:[#allocation8 + $0x100] sm:$0xff]  ;;  %v337_v40 = vld [vmem:[#allocation8 + $0x3c8] sm:$0xff] }
  0x37   :  { %381 = vmatpush.msra.mxu1 %v256_v56  ;;  %362 = vmatpush.msra.mxu0 %v222_v57  ;;  %v290_v2 = vld [vmem:[#allocation8 + $0x250] sm:$0xff]  ;;  %v284_v15 = vld [vmem:[#allocation8 + $0x220] sm:$0xff]  ;;  %v231_v41 = vld [vmem:[#allocation8 + $0x78] sm:$0xff] }
  0x38   :  { %398 = vmatpush.msra.mxu2 %v294_v58  ;;  %418 = vmatpush.msra.mxu3 %v326_v59  ;;  %v322_v3 = vld [vmem:[#allocation8 + $0x350] sm:$0xff]  ;;  %v316_v16 = vld [vmem:[#allocation8 + $0x320] sm:$0xff]  ;;  %v263_v42 = vld [vmem:[#allocation8 + $0x178] sm:$0xff] }
  0x39   :  { %382 = vmatpush.msra.mxu1 %v254_v60  ;;  %363 = vmatpush.msra.mxu0 %v220_v61  ;;  %v250_v4 = vld [vmem:[#allocation8 + $0x110] sm:$0xff]  ;;  %v280_v23 = vld [vmem:[#allocation8 + $0x200] sm:$0xff]  ;;  %v303_v43 = vld [vmem:[#allocation8 + $0x2b8] sm:$0xff] }
  0x3a   :  { %399 = vmatpush.msra.mxu2 %v292_v62  ;;  %419 = vmatpush.msra.mxu3 %v324_v63  ;;  %v286_v11 = vld [vmem:[#allocation8 + $0x230] sm:$0xff]  ;;  %v312_v24 = vld [vmem:[#allocation8 + $0x300] sm:$0xff]  ;;  %v335_v44 = vld [vmem:[#allocation8 + $0x3b8] sm:$0xff] }
  0x3b   :  { %383 = vmatpush.msra.mxu1 %v252_v0  ;;  %364 = vmatpush.msra.mxu0 %v218_v1  ;;  %v318_v12 = vld [vmem:[#allocation8 + $0x330] sm:$0xff]  ;;  %v229_v45 = vld [vmem:[#allocation8 + $0x68] sm:$0xff]  ;;  %v227_v49 = vld [vmem:[#allocation8 + $0x58] sm:$0xff] }
  0x3c   :  { %400 = vmatpush.msra.mxu2 %v290_v2  ;;  %420 = vmatpush.msra.mxu3 %v322_v3  ;;  %v282_v19 = vld [vmem:[#allocation8 + $0x210] sm:$0xff]  ;;  %v261_v46 = vld [vmem:[#allocation8 + $0x168] sm:$0xff]  ;;  %v259_v50 = vld [vmem:[#allocation8 + $0x158] sm:$0xff] }
  0x3d   :  { %384 = vmatpush.msra.mxu1 %v250_v4  ;;  %365 = vmatpush.msra.mxu0 %v216_v5  ;;  %v314_v20 = vld [vmem:[#allocation8 + $0x310] sm:$0xff]  ;;  %v301_v47 = vld [vmem:[#allocation8 + $0x2a8] sm:$0xff]  ;;  %v299_v51 = vld [vmem:[#allocation8 + $0x298] sm:$0xff] }
  0x3e   :  { %401 = vmatpush.msra.mxu2 %v288_v6  ;;  %421 = vmatpush.msra.mxu3 %v320_v7  ;;  %v333_v48 = vld [vmem:[#allocation8 + $0x3a8] sm:$0xff]  ;;  %v331_v52 = vld [vmem:[#allocation8 + $0x398] sm:$0xff] }
  0x3f   :  { %385 = vmatpush.msra.mxu1 %v248_v8  ;;  %430 = vmatpush.msrb.mxu0 %v247_v9  ;;  %v225_v53 = vld [vmem:[#allocation8 + $0x48] sm:$0xff]  ;;  %v223_v57 = vld [vmem:[#allocation8 + $0x38] sm:$0xff] }
  0x40   :  { %402 = vmatpush.msra.mxu2 %v286_v11  ;;  %422 = vmatpush.msra.mxu3 %v318_v12  ;;  %v257_v54 = vld [vmem:[#allocation8 + $0x148] sm:$0xff]  ;;  %v255_v58 = vld [vmem:[#allocation8 + $0x138] sm:$0xff] }
  0x41   :  { %450 = vmatpush.msrb.mxu1 %v279_v10  ;;  %431 = vmatpush.msrb.mxu0 %v245_v13  ;;  %v297_v55 = vld [vmem:[#allocation8 + $0x288] sm:$0xff]  ;;  %v295_v59 = vld [vmem:[#allocation8 + $0x278] sm:$0xff] }
  0x42   :  { %403 = vmatpush.msra.mxu2 %v284_v15  ;;  %423 = vmatpush.msra.mxu3 %v316_v16  ;;  %v329_v56 = vld [vmem:[#allocation8 + $0x388] sm:$0xff]  ;;  %v327_v60 = vld [vmem:[#allocation8 + $0x378] sm:$0xff] }
  0x43   :  { %451 = vmatpush.msrb.mxu1 %v277_v14  ;;  %432 = vmatpush.msrb.mxu0 %v243_v17  ;;  %v221_v61 = vld [vmem:[#allocation8 + $0x28] sm:$0xff]  ;;  %v219_v1 = vld [vmem:[#allocation8 + $0x18] sm:$0xff] }
  0x44   :  { %404 = vmatpush.msra.mxu2 %v282_v19  ;;  %424 = vmatpush.msra.mxu3 %v314_v20  ;;  %v253_v62 = vld [vmem:[#allocation8 + $0x128] sm:$0xff]  ;;  %v251_v2 = vld [vmem:[#allocation8 + $0x118] sm:$0xff] }
  0x45   :  { %452 = vmatpush.msrb.mxu1 %v275_v18  ;;  %433 = vmatpush.msrb.mxu0 %v241_v21  ;;  %v293_v63 = vld [vmem:[#allocation8 + $0x268] sm:$0xff]  ;;  %v291_v3 = vld [vmem:[#allocation8 + $0x258] sm:$0xff] }
  0x46   :  { %405 = vmatpush.msra.mxu2 %v280_v23  ;;  %425 = vmatpush.msra.mxu3 %v312_v24  ;;  %v325_v0 = vld [vmem:[#allocation8 + $0x368] sm:$0xff]  ;;  %v323_v4 = vld [vmem:[#allocation8 + $0x358] sm:$0xff] }
  0x47   :  { %453 = vmatpush.msrb.mxu1 %v273_v22  ;;  %434 = vmatpush.msrb.mxu0 %v239_v25  ;;  %v217_v5 = vld [vmem:[#allocation8 + $0x8] sm:$0xff]  ;;  %v287_v9 = vld [vmem:[#allocation8 + $0x238] sm:$0xff] }
  0x48   :  { %470 = vmatpush.msrb.mxu2 %v311_v27  ;;  %490 = vmatpush.msrb.mxu3 %v343_v28  ;;  %v249_v6 = vld [vmem:[#allocation8 + $0x108] sm:$0xff]  ;;  %v319_v10 = vld [vmem:[#allocation8 + $0x338] sm:$0xff] }
  0x49   :  { %454 = vmatpush.msrb.mxu1 %v271_v26  ;;  %435 = vmatpush.msrb.mxu0 %v237_v29  ;;  %v289_v7 = vld [vmem:[#allocation8 + $0x248] sm:$0xff]  ;;  %v283_v13 = vld [vmem:[#allocation8 + $0x218] sm:$0xff] }
  0x4a   :  { %471 = vmatpush.msrb.mxu2 %v309_v31  ;;  %491 = vmatpush.msrb.mxu3 %v341_v32  ;;  %v321_v8 = vld [vmem:[#allocation8 + $0x348] sm:$0xff]  ;;  %v315_v14 = vld [vmem:[#allocation8 + $0x318] sm:$0xff] }
  0x4b   :  { %455 = vmatpush.msrb.mxu1 %v269_v30  ;;  %436 = vmatpush.msrb.mxu0 %v235_v33  ;;  %v285_v11 = vld [vmem:[#allocation8 + $0x228] sm:$0xff]  ;;  %v118_v17 = vld [vmem:[#allocation7] sm:$0xf]  ;;  %v526_v30 = vld [vmem:[#allocation10 + $0x70] sm:$0xff] }
  0x4c   :  { %472 = vmatpush.msrb.mxu2 %v307_v35  ;;  %492 = vmatpush.msrb.mxu3 %v339_v36  ;;  %v317_v12 = vld [vmem:[#allocation8 + $0x328] sm:$0xff]  ;;  %v120_v18 = vperm.slane %v118_v17, 0  ;;  %v121_v19 = vperm.slane %v118_v17, 1  ;;  %v527_v26 = vld [vmem:[#allocation10 + $0x78] sm:$0xff]  ;;  %v122_v28 = vperm.slane %v118_v17, 2  ;;  %v123_v29 = vperm.slane %v118_v17, 3 }
  0x4d   :  { %456 = vmatpush.msrb.mxu1 %v267_v34  ;;  %437 = vmatpush.msrb.mxu0 %v233_v37  ;;  %v281_v15 = vld [vmem:[#allocation8 + $0x208] sm:$0xff]  ;;  %v543_v27 = vld [vmem:[#allocation10 + $0xf8] sm:$0xff]  ;;  %v524_v36 = vld [vmem:[#allocation10 + $0x60] sm:$0xff] }
  0x4e   :  { %473 = vmatpush.msrb.mxu2 %v305_v39  ;;  %493 = vmatpush.msrb.mxu3 %v337_v40  ;;  %v313_v16 = vld [vmem:[#allocation8 + $0x308] sm:$0xff]  ;;  %v523_v39 = vld [vmem:[#allocation10 + $0x58] sm:$0xff]  ;;  %v522_v40 = vld [vmem:[#allocation10 + $0x50] sm:$0xff] }
  0x4f   :  { %457 = vmatpush.msrb.mxu1 %v265_v38  ;;  %438 = vmatpush.msrb.mxu0 %v231_v41  ;;  %v525_v31 = vld [vmem:[#allocation10 + $0x68] sm:$0xff]  ;;  %v542_v41 = vld [vmem:[#allocation10 + $0xf0] sm:$0xff] }
  0x50   :  { %474 = vmatpush.msrb.mxu2 %v303_v43  ;;  %494 = vmatpush.msrb.mxu3 %v335_v44  ;;  %v541_v43 = vld [vmem:[#allocation10 + $0xe8] sm:$0xff]  ;;  %v520_v44 = vld [vmem:[#allocation10 + $0x40] sm:$0xff] }
  0x51   :  { %458 = vmatpush.msrb.mxu1 %v263_v42  ;;  %439 = vmatpush.msrb.mxu0 %v229_v45  ;;  %v521_v42 = vld [vmem:[#allocation10 + $0x48] sm:$0xff]  ;;  %v540_v45 = vld [vmem:[#allocation10 + $0xe0] sm:$0xff] }
  0x52   :  { %475 = vmatpush.msrb.mxu2 %v301_v47  ;;  %495 = vmatpush.msrb.mxu3 %v333_v48  ;;  %v539_v47 = vld [vmem:[#allocation10 + $0xd8] sm:$0xff]  ;;  %v518_v48 = vld [vmem:[#allocation10 + $0x30] sm:$0xff] }
  0x53   :  { %459 = vmatpush.msrb.mxu1 %v261_v46  ;;  %440 = vmatpush.msrb.mxu0 %v227_v49  ;;  %v519_v46 = vld [vmem:[#allocation10 + $0x38] sm:$0xff]  ;;  %v538_v49 = vld [vmem:[#allocation10 + $0xd0] sm:$0xff] }
  0x54   :  { %476 = vmatpush.msrb.mxu2 %v299_v51  ;;  %496 = vmatpush.msrb.mxu3 %v331_v52  ;;  %v537_v51 = vld [vmem:[#allocation10 + $0xc8] sm:$0xff]  ;;  %v516_v52 = vld [vmem:[#allocation10 + $0x20] sm:$0xff] }
  0x55   :  { %460 = vmatpush.msrb.mxu1 %v259_v50  ;;  %441 = vmatpush.msrb.mxu0 %v225_v53  ;;  %v517_v50 = vld [vmem:[#allocation10 + $0x28] sm:$0xff]  ;;  %v536_v53 = vld [vmem:[#allocation10 + $0xc0] sm:$0xff] }
  0x56   :  { %477 = vmatpush.msrb.mxu2 %v297_v55  ;;  %497 = vmatpush.msrb.mxu3 %v329_v56  ;;  %v535_v55 = vld [vmem:[#allocation10 + $0xb8] sm:$0xff]  ;;  %v514_v56 = vld [vmem:[#allocation10 + $0x10] sm:$0xff] }
  0x57   :  { %461 = vmatpush.msrb.mxu1 %v257_v54  ;;  %442 = vmatpush.msrb.mxu0 %v223_v57  ;;  %v515_v54 = vld [vmem:[#allocation10 + $0x18] sm:$0xff]  ;;  %v534_v57 = vld [vmem:[#allocation10 + $0xb0] sm:$0xff] }
  0x58   :  { %478 = vmatpush.msrb.mxu2 %v295_v59  ;;  %498 = vmatpush.msrb.mxu3 %v327_v60  ;;  %v533_v59 = vld [vmem:[#allocation10 + $0xa8] sm:$0xff]  ;;  %v512_v60 = vld [vmem:[#allocation10] sm:$0xff] }
  0x59   :  { %462 = vmatpush.msrb.mxu1 %v255_v58  ;;  %443 = vmatpush.msrb.mxu0 %v221_v61  ;;  %v513_v58 = vld [vmem:[#allocation10 + $0x8] sm:$0xff]  ;;  %v532_v61 = vld [vmem:[#allocation10 + $0xa0] sm:$0xff] }
  0x5a   :  { %479 = vmatpush.msrb.mxu2 %v293_v63  ;;  %499 = vmatpush.msrb.mxu3 %v325_v0  ;;  %v530_v63 = vld [vmem:[#allocation10 + $0x90] sm:$0xff]  ;;  %v529_v0 = vld [vmem:[#allocation10 + $0x88] sm:$0xff] }
  0x5b   :  { %463 = vmatpush.msrb.mxu1 %v253_v62  ;;  %444 = vmatpush.msrb.mxu0 %v219_v1  ;;  %v531_v62 = vld [vmem:[#allocation10 + $0x98] sm:$0xff]  ;;  %v528_v1 = vld [vmem:[#allocation10 + $0x80] sm:$0xff] }
  0x5c   :  { %480 = vmatpush.msrb.mxu2 %v291_v3  ;;  %500 = vmatpush.msrb.mxu3 %v323_v4 }
  0x5d   :  { %464 = vmatpush.msrb.mxu1 %v251_v2  ;;  %445 = vmatpush.msrb.mxu0 %v217_v5  ;;  %v344_v2 = vld [vmem:[%s885_s4] sm:$0x3] }
  0x5e   :  { %481 = vmatpush.msrb.mxu2 %v289_v7  ;;  %501 = vmatpush.msrb.mxu3 %v321_v8  ;;  %v346_v4 = vperm.slane %v344_v2, 0  ;;  %v347_v8 = vperm.slane %v344_v2, 1 }
  0x5f   :  { %465 = vmatpush.msrb.mxu1 %v249_v6 }
  0x60   :  { %482 = vmatpush.msrb.mxu2 %v287_v9  ;;  %502 = vmatpush.msrb.mxu3 %v319_v10 }
  0x62   :  { %483 = vmatpush.msrb.mxu2 %v285_v11  ;;  %503 = vmatpush.msrb.mxu3 %v317_v12 }
  0x64   :  { %484 = vmatpush.msrb.mxu2 %v283_v13  ;;  %504 = vmatpush.msrb.mxu3 %v315_v14 }
  0x66   :  { %485 = vmatpush.msrb.mxu2 %v281_v15  ;;  %505 = vmatpush.msrb.mxu3 %v313_v16 }
  0xa2   :  { %v149_v20 = vpop.f32.mrf.mxu2  ;;  %v169_v21 = vpop.f32.mrf.mxu3 }
  0xa3   :  { %v150_v22 = vadd.f32 %v149_v20, %v120_v18  ;;  %v170_v23 = vadd.f32 %v169_v21, %v121_v19 }
  0xa5   :  { %v212_v24 = vmax.f32 %v150_v22, 0.0  ;;  %v213_v25 = vmax.f32 %v170_v23, 0.0  ;;  %v644_v23 = vld [vmem:[%s887_s6] ss:$0 sm:$0xff] }
  0xa7   :  { %366 = vmatmul.f32.vlgmr.msra.gmra.mxu0 %v212_v24  ;;  %386 = vmatmul.f32.vlgmr.msra.gmra.mxu1 %v213_v25 }
  0xa8   :  { %548 = vmatpush.msra.mxu0 %v527_v26  ;;  %568 = vmatpush.msra.mxu1 %v543_v27 }
  0xaa   :  { %v189_v32 = vpop.f32.mrf.mxu2  ;;  %v209_v33 = vpop.f32.mrf.mxu3  ;;  %549 = vmatpush.msra.mxu0 %v526_v30  ;;  %569 = vmatpush.msra.mxu1 %v542_v41 }
  0xab   :  { %v190_v34 = vadd.f32 %v189_v32, %v122_v28  ;;  %v210_v35 = vadd.f32 %v209_v33, %v123_v29 }
  0xac   :  { %550 = vmatpush.msra.mxu0 %v525_v31  ;;  %570 = vmatpush.msra.mxu1 %v541_v43 }
  0xad   :  { %v214_v37 = vmax.f32 %v190_v34, 0.0  ;;  %v215_v38 = vmax.f32 %v210_v35, 0.0 }
  0xae   :  { %551 = vmatpush.msra.mxu0 %v524_v36  ;;  %571 = vmatpush.msra.mxu1 %v540_v45 }
  0xaf   :  { %406 = vmatmul.f32.vlgmr.msra.gmra.mxu2 %v214_v37  ;;  %426 = vmatmul.f32.vlgmr.msra.gmra.mxu3 %v215_v38 }
  0xb0   :  { %446 = vmatmul.f32.vlgmr.msrb.gmra.mxu0 %v212_v24  ;;  %466 = vmatmul.f32.vlgmr.msrb.gmra.mxu1 %v213_v25 }
  0xb1   :  { %552 = vmatpush.msra.mxu0 %v523_v39  ;;  %572 = vmatpush.msra.mxu1 %v539_v47 }
  0xb3   :  { %553 = vmatpush.msra.mxu0 %v522_v40  ;;  %573 = vmatpush.msra.mxu1 %v538_v49 }
  0xb5   :  { %554 = vmatpush.msra.mxu0 %v521_v42  ;;  %574 = vmatpush.msra.mxu1 %v537_v51 }
  0xb7   :  { %486 = vmatmul.f32.vlgmr.msrb.gmra.mxu2 %v214_v37  ;;  %506 = vmatmul.f32.vlgmr.msrb.gmra.mxu3 %v215_v38 }
  0xb8   :  { %555 = vmatpush.msra.mxu0 %v520_v44  ;;  %575 = vmatpush.msra.mxu1 %v536_v53 }
  0xba   :  { %556 = vmatpush.msra.mxu0 %v519_v46  ;;  %576 = vmatpush.msra.mxu1 %v535_v55 }
  0xbc   :  { %557 = vmatpush.msra.mxu0 %v518_v48  ;;  %577 = vmatpush.msra.mxu1 %v534_v57 }
  0xbe   :  { %558 = vmatpush.msra.mxu0 %v517_v50  ;;  %578 = vmatpush.msra.mxu1 %v533_v59 }
  0xc0   :  { %559 = vmatpush.msra.mxu0 %v516_v52  ;;  %579 = vmatpush.msra.mxu1 %v532_v61 }
  0xc2   :  { %560 = vmatpush.msra.mxu0 %v515_v54  ;;  %580 = vmatpush.msra.mxu1 %v531_v62 }
  0xc4   :  { %561 = vmatpush.msra.mxu0 %v514_v56  ;;  %581 = vmatpush.msra.mxu1 %v530_v63 }
  0xc6   :  { %562 = vmatpush.msra.mxu0 %v513_v58  ;;  %582 = vmatpush.msra.mxu1 %v529_v0 }
  0xc8   :  { %563 = vmatpush.msra.mxu0 %v512_v60  ;;  %583 = vmatpush.msra.mxu1 %v528_v1 }
 0x124   :  { %v367_v3 = vpop.f32.mrf.mxu0  ;;  %v387_v6 = vpop.f32.mrf.mxu1 }
 0x125   :  { %v368_v5 = vadd.f32 %v367_v3, %v346_v4 }
 0x127   :  { %v388_v7 = vadd.f32 %v387_v6, %v368_v5 }
 0x12d   :  { %v447_v9 = vpop.f32.mrf.mxu0  ;;  %v467_v16 = vpop.f32.mrf.mxu1 }
 0x12e   :  { %v448_v13 = vadd.f32 %v447_v9, %v347_v8 }
 0x130   :  { %v468_v17 = vadd.f32 %v467_v16, %v448_v13 }
 0x132   :  { %v407_v10 = vpop.f32.mrf.mxu2  ;;  %v427_v11 = vpop.f32.mrf.mxu3 }
 0x133   :  { %v408_v12 = vadd.f32 %v407_v10, %v388_v7 }
 0x135   :  { %v428_v14 = vadd.f32 %v427_v11, %v408_v12 }
 0x137   :  { %v510_v15 = vmax.f32 %v428_v14, 0.0 }
 0x139   :  { %564 = vmatmul.f32.vlgmr.msra.gmra.mxu0 %v510_v15 }
 0x13a   :  { %v487_v18 = vpop.f32.mrf.mxu2  ;;  %v507_v20 = vpop.f32.mrf.mxu3 }
 0x13b   :  { %v488_v19 = vadd.f32 %v487_v18, %v468_v17 }
 0x13d   :  { %v508_v21 = vadd.f32 %v507_v20, %v488_v19 }
 0x13f   :  { %v511_v22 = vmax.f32 %v508_v21, 0.0 }
 0x141   :  { %584 = vmatmul.f32.vlgmr.msra.gmra.mxu1 %v511_v22 }
 0x1b6   :  { %v565_v24 = vpop.f32.mrf.mxu0 }
 0x1b7   :  { %v566_v25 = vadd.f32 %v644_v23, %v565_v24 }
 0x1be   :  { %v585_v26 = vpop.f32.mrf.mxu1 }
 0x1bf   :  { %v586_v27 = vadd.f32 %v585_v26, %v566_v25 }
 0x1c1   :  { %v631_v28 = vmul.f32 -1.442695, %v586_v27 }
 0x1c3   :  { %645 = vpow2.f32 %v631_v28 }
 0x1c9   :  { %v646_v29 = vpop.eup %645 }
 0x1ca   :  { %v591_v30 = vadd.f32 1.0, %v646_v29 }
 0x1cc   :  { %647 = vrcp.f32 %v591_v30  ;;  %v603_v34 = vand.u32 2147483648, %v591_v30  ;;  %v601_v36 = vand.u32 2147483647, %v591_v30  ;;  %vm597_vm2 = vweird.f32 %v591_v30 }
 0x1ce   :  { %v604_v38 = vor.u32 1.1754944e-38, %v603_v34  ;;  %vm602_vm4 = vcmp.eq.f32.partialorder %v601_v36, 8.507059e+37 }
 0x1d2   :  { %v648_v31 = vpop.eup %647 }
 0x1d3   :  { %v593_v32 = vmul.f32 %v648_v31, %v591_v30  ;;  %vm598_vm1 = vweird.f32 %v648_v31 }
 0x1d4   :  { %vm599_vm3 = vmor %vm597_vm2, %vm598_vm1 }
 0x1d5   :  { %v594_v33 = vsub.f32 1.0, %v593_v32 }
 0x1d7   :  { %v595_v35 = vmul.f32 %v648_v31, %v594_v33 }
 0x1d9   :  { %v596_v37 = vadd.f32 %v648_v31, %v595_v35 }
 0x1db   :  { %v600_v39 = vsel %vm599_vm3, %v648_v31, %v596_v37 }
 0x1dc   :  { %v605_v40 = vsel %vm602_vm4, %v604_v38, %v600_v39 }
 0x1dd   :  { %607 = vst [vmem:[#allocation11] sm:$0xff] %v605_v40 }
 0x1de   :  { %618 = dma.vmem_to_hbm [thread:$0]  %s614_s8, 128, %s616_s10, [#allocation4]  }
 0x1df   :  { %799 = dma.done.wait [#allocation4], 128  }
 0x1e0   :  { %800 = vsyncadd [#allocation4], 4294967168 }
 0x1e1   :  { %623 = vsyncpa [#allocation3], 1 }
 0x1e2   :  { %624 = vsyncpa [#allocation6], 1 }
 0x1e3   :  { %625 = vsyncpa [#allocation9], 1 }
 0x1e4   :  { %626 = vsyncpa [#allocation4], 1 }

</bundles_post_ra>
